<compile_context>
chip_gen: v7x
topology: tpu7x:2x2x1
jax: 0.10.0
libtpu: 0.0.40
codegen_flags: <defaults>
</compile_context>

<pallas_src>
import functools

import jax
import jax.numpy as jnp
from jax.experimental import pallas as pl
from jax.experimental.pallas import tpu as pltpu


def _mha(q_in, c_in, wq, wk, wv, wo, *, heads, scale):
    """Multi-head cross-attention for one batch element.

    q_in : (nq, dim) float32        query-side input
    c_in : (nc, dim) float32        context (keys/values) input
    wq/wk/wv : (heads, dim, dim_head) bfloat16  head-blocked projections
    wo       : (heads, dim_head, dim) bfloat16  head-blocked output projection
    returns  : (nq, dim) float32
    """
    nq, dim = q_in.shape
    nc = c_in.shape[0]

    qb = jnp.broadcast_to(q_in.astype(jnp.bfloat16)[None], (heads, nq, dim))
    cb = jnp.broadcast_to(c_in.astype(jnp.bfloat16)[None], (heads, nc, dim))

    # Per-head projections as one batched matmul each (batch dim = heads).
    q = jnp.einsum('hqd,hdk->hqk', qb, wq, preferred_element_type=jnp.float32)
    k = jnp.einsum('hcd,hdk->hck', cb, wk, preferred_element_type=jnp.float32)
    v = jnp.einsum('hcd,hdk->hck', cb, wv, preferred_element_type=jnp.float32)

    # Scores: contract dim_head, batched over heads (no explicit .T / XLU xpose).
    s = jnp.einsum('hqk,hck->hqc',
                   q.astype(jnp.bfloat16), k.astype(jnp.bfloat16),
                   preferred_element_type=jnp.float32) * scale

    # Numerically-stable softmax along the context axis (float32).
    s = s - jnp.max(s, axis=-1, keepdims=True)
    e = jnp.exp(s)
    attn = e * pl.reciprocal(jnp.sum(e, axis=-1, keepdims=True), approx=True)

    o = jnp.einsum('hqc,hck->hqk',
                   attn.astype(jnp.bfloat16), v.astype(jnp.bfloat16),
                   preferred_element_type=jnp.float32)          # (h, nq, d)

    # Output projection per head, summed over heads == concat(heads) @ wo.
    y = jnp.einsum('hqk,hkd->hqd', o.astype(jnp.bfloat16), wo,
                   preferred_element_type=jnp.float32)          # (h, nq, dim)
    return jnp.sum(y, axis=0)


def _isab_kernel(lat_ref, x_ref,
                 wq1_ref, wk1_ref, wv1_ref, wo1_ref,
                 wq2_ref, wk2_ref, wv2_ref, wo2_ref,
                 out_ref, lat_out_ref,
                 *, heads, scale):
    x = x_ref[0]          # (n, dim)
    lat = lat_ref[...]    # (num_latents, dim) -- shared across batch, resident

    # Phase 1: latents attend to x.
    new_lat = _mha(lat, x, wq1_ref[...], wk1_ref[...], wv1_ref[...],
                   wo1_ref[...], heads=heads, scale=scale)
    lat_out_ref[0] = new_lat

    # Phase 2: x attends to the updated latents. new_lat stays on-chip --
    # no HBM round-trip, no second kernel launch.
    out_ref[0] = _mha(x, new_lat, wq2_ref[...], wk2_ref[...], wv2_ref[...],
                      wo2_ref[...], heads=heads, scale=scale)


def _head_block(w, heads, dim_head, out_proj=False):
    """Rearrange a dense projection into head-blocked bf16 form.

    (dim, inner)  -> (heads, dim, dim_head)      for q/k/v projections
    (inner, dim)  -> (heads, dim_head, dim)      for the output projection
    """
    if out_proj:
        inner, dim = w.shape
        return w.reshape(heads, dim_head, dim).astype(jnp.bfloat16)
    dim, inner = w.shape
    return w.reshape(dim, heads, dim_head).transpose(1, 0, 2).astype(jnp.bfloat16)


def isab_forward(x, latents, attn1_params, attn2_params, *, heads, dim_head):
    """ISAB forward.  x: (b, n, dim);  latents: (num_latents, dim).

    Returns (out, latents') matching the PyTorch module's (out, latents).
    """
    b, n, dim = x.shape
    num_latents = latents.shape[0]
    scale = dim_head ** -0.5

    # Head-blocked bf16 weights, prepared once on the host side.
    w1 = (_head_block(attn1_params['wq'], heads, dim_head),
          _head_block(attn1_params['wk'], heads, dim_head),
          _head_block(attn1_params['wv'], heads, dim_head),
          _head_block(attn1_params['wo'], heads, dim_head, out_proj=True))
    w2 = (_head_block(attn2_params['wq'], heads, dim_head),
          _head_block(attn2_params['wk'], heads, dim_head),
          _head_block(attn2_params['wv'], heads, dim_head),
          _head_block(attn2_params['wo'], heads, dim_head, out_proj=True))

    kernel = functools.partial(_isab_kernel, heads=heads, scale=scale)

    w_spec = pl.BlockSpec((heads, dim, dim_head), lambda i: (0, 0, 0))
    wo_spec = pl.BlockSpec((heads, dim_head, dim), lambda i: (0, 0, 0))

    out, new_latents = pl.pallas_call(
        kernel,
        out_shape=(jax.ShapeDtypeStruct((b, n, dim), jnp.float32),
                   jax.ShapeDtypeStruct((b, num_latents, dim), jnp.float32)),
        grid_spec=pltpu.PrefetchScalarGridSpec(
            num_scalar_prefetch=0,
            grid=(b,),
            in_specs=[
                # latents: constant block index -> never materialised per
                # batch element, stays resident across grid steps.
                pl.BlockSpec((num_latents, dim), lambda i: (0, 0)),
                pl.BlockSpec((1, n, dim), lambda i: (i, 0, 0)),
                w_spec, w_spec, w_spec, wo_spec,   # attn1
                w_spec, w_spec, w_spec, wo_spec,   # attn2
            ],
            out_specs=[
                pl.BlockSpec((1, n, dim), lambda i: (i, 0, 0)),
                pl.BlockSpec((1, num_latents, dim), lambda i: (i, 0, 0)),
            ],
        ),
        compiler_params=pltpu.CompilerParams(
            dimension_semantics=("parallel",)),
    )(latents, x, *w1, *w2)

    return out, new_latents


def init_attention_params(key, dim, heads, dim_head):
    """Deterministic synthetic weights (stand-ins for nn.Linear, bias=False)."""
    inner = heads * dim_head
    k1, k2, k3, k4 = jax.random.split(key, 4)
    # Stored already transposed so y = x @ W  (torch Linear does x @ W.T).
    # wk/wv together play the role of the module's single to_kv matrix.
    sq = 1.0 / jnp.sqrt(dim)
    so = 1.0 / jnp.sqrt(inner)
    return dict(
        wq=jax.random.normal(k1, (dim, inner), jnp.float32) * sq,
        wk=jax.random.normal(k2, (dim, inner), jnp.float32) * sq,
        wv=jax.random.normal(k3, (dim, inner), jnp.float32) * sq,
        wo=jax.random.normal(k4, (inner, dim), jnp.float32) * so,
    )


# ---------------------------------------------------------------------------
# Pure-JAX reference mirroring the PyTorch forward (with the same bf16 MXU
# operand precision / f32 accumulation the kernel uses) for validation.
# ---------------------------------------------------------------------------
def _ref_attention(x, ctx, p, heads, dim_head):
    scale = dim_head ** -0.5
    bf = lambda t: t.astype(jnp.bfloat16)
    f32 = jnp.float32
    q = jnp.einsum('bnd,dk->bnk', bf(x), bf(p['wq']), preferred_element_type=f32)
    k = jnp.einsum('bnd,dk->bnk', bf(ctx), bf(p['wk']), preferred_element_type=f32)
    v = jnp.einsum('bnd,dk->bnk', bf(ctx), bf(p['wv']), preferred_element_type=f32)

    def split_heads(t):
        b, n, _ = t.shape
        return t.reshape(b, n, heads, dim_head).transpose(0, 2, 1, 3)

    qh, kh, vh = map(split_heads, (q, k, v))
    dots = jnp.einsum('bhid,bhjd->bhij', bf(qh), bf(kh),
                      preferred_element_type=f32) * scale
    attn = jax.nn.softmax(dots, axis=-1)
    o = jnp.einsum('bhij,bhjd->bhid', bf(attn), bf(vh),
                   preferred_element_type=f32)
    o = o.transpose(0, 2, 1, 3).reshape(x.shape[0], x.shape[1], heads * dim_head)
    return jnp.einsum('bnk,kd->bnd', bf(o), bf(p['wo']),
                      preferred_element_type=f32)


def _ref_isab(x, latents, p1, p2, heads, dim_head):
    b = x.shape[0]
    lat = jnp.broadcast_to(latents[None], (b,) + latents.shape)
    lat = _ref_attention(lat, x, p1, heads, dim_head)
    out = _ref_attention(x, lat, p2, heads, dim_head)
    return out, lat


if __name__ == "__main__":
    # Small shapes consistent with the module: dim=64, heads=2, dim_head=64
    # (module default dim_head), num_latents=8, batch=2, seq=16.
    dim, heads, dim_head = 64, 2, 64
    num_latents, batch, seq = 8, 2, 16

    key = jax.random.PRNGKey(0)
    k_x, k_lat, k_a1, k_a2 = jax.random.split(key, 4)

    x = jax.random.normal(k_x, (batch, seq, dim), jnp.float32)
    latents = jax.random.normal(k_lat, (num_latents, dim), jnp.float32)

    attn1_params = init_attention_params(k_a1, dim, heads, dim_head)
    attn2_params = init_attention_params(k_a2, dim, heads, dim_head)

    out, new_latents = isab_forward(
        x, latents, attn1_params, attn2_params, heads=heads, dim_head=dim_head)
    jax.block_until_ready((out, new_latents))

    # Validate against the reference (same matmul precision; tolerance covers
    # the EUP approximate reciprocal and accumulation-order differences).
    ref_out, ref_lat = _ref_isab(x, latents, attn1_params, attn2_params,
                                 heads, dim_head)
    assert out.shape == (batch, seq, dim)
    assert new_latents.shape == (batch, num_latents, dim)
    assert jnp.allclose(out, ref_out, atol=2e-2, rtol=2e-2)
    assert jnp.allclose(new_latents, ref_lat, atol=2e-2, rtol=2e-2)

    print("KERNEL_OK")
</pallas_src>

<mosaic_0001>
module attributes {stable_mosaic.version = 11 : i64} {
  func.func @_isab_kernel(%arg0: i32, %arg1: memref<8x64xf32, #tpu.memory_space<vmem>>, %arg2: memref<1x16x64xf32, #tpu.memory_space<vmem>>, %arg3: memref<2x64x64xbf16, #tpu.memory_space<vmem>>, %arg4: memref<2x64x64xbf16, #tpu.memory_space<vmem>>, %arg5: memref<2x64x64xbf16, #tpu.memory_space<vmem>>, %arg6: memref<2x64x64xbf16, #tpu.memory_space<vmem>>, %arg7: memref<2x64x64xbf16, #tpu.memory_space<vmem>>, %arg8: memref<2x64x64xbf16, #tpu.memory_space<vmem>>, %arg9: memref<2x64x64xbf16, #tpu.memory_space<vmem>>, %arg10: memref<2x64x64xbf16, #tpu.memory_space<vmem>>, %arg11: memref<1x16x64xf32, #tpu.memory_space<vmem>>, %arg12: memref<1x8x64xf32, #tpu.memory_space<vmem>>) attributes {dimension_semantics = [#tpu.dimension_semantics<parallel>], iteration_bounds = array<i64: 2>, scalar_prefetch = 0 : i64, scratch_operands = 0 : i64, tpu.core_type = #tpu.core_type<tc>, window_params = [{pipeline_mode = #tpu.pipeline_mode<synchronous>, transform_indices = @transform_0, window_bounds = array<i64: 8, 64>}, {transform_indices = @transform_1, window_bounds = array<i64: 1, 16, 64>}, {pipeline_mode = #tpu.pipeline_mode<synchronous>, transform_indices = @transform_2, window_bounds = array<i64: 2, 64, 64>}, {pipeline_mode = #tpu.pipeline_mode<synchronous>, transform_indices = @transform_3, window_bounds = array<i64: 2, 64, 64>}, {pipeline_mode = #tpu.pipeline_mode<synchronous>, transform_indices = @transform_4, window_bounds = array<i64: 2, 64, 64>}, {pipeline_mode = #tpu.pipeline_mode<synchronous>, transform_indices = @transform_5, window_bounds = array<i64: 2, 64, 64>}, {pipeline_mode = #tpu.pipeline_mode<synchronous>, transform_indices = @transform_6, window_bounds = array<i64: 2, 64, 64>}, {pipeline_mode = #tpu.pipeline_mode<synchronous>, transform_indices = @transform_7, window_bounds = array<i64: 2, 64, 64>}, {pipeline_mode = #tpu.pipeline_mode<synchronous>, transform_indices = @transform_8, window_bounds = array<i64: 2, 64, 64>}, {pipeline_mode = #tpu.pipeline_mode<synchronous>, transform_indices = @transform_9, window_bounds = array<i64: 2, 64, 64>}, {transform_indices = @transform_10, window_bounds = array<i64: 1, 16, 64>}, {transform_indices = @transform_11, window_bounds = array<i64: 1, 8, 64>}]} {
    %c0 = arith.constant 0 : index
    %c0_0 = arith.constant 0 : index
    %c0_1 = arith.constant 0 : index
    %0 = vector.load %arg2[%c0, %c0_0, %c0_1] : memref<1x16x64xf32, #tpu.memory_space<vmem>>, vector<1x16x64xf32>
    %1 = vector.shape_cast %0 : vector<1x16x64xf32> to vector<16x64xf32>
    %c0_2 = arith.constant 0 : index
    %c0_3 = arith.constant 0 : index
    %2 = vector.load %arg1[%c0_2, %c0_3] : memref<8x64xf32, #tpu.memory_space<vmem>>, vector<8x64xf32>
    %c0_4 = arith.constant 0 : index
    %c0_5 = arith.constant 0 : index
    %c0_6 = arith.constant 0 : index
    %3 = vector.load %arg3[%c0_4, %c0_5, %c0_6] : memref<2x64x64xbf16, #tpu.memory_space<vmem>>, vector<2x64x64xbf16>
    %c0_7 = arith.constant 0 : index
    %c0_8 = arith.constant 0 : index
    %c0_9 = arith.constant 0 : index
    %4 = vector.load %arg4[%c0_7, %c0_8, %c0_9] : memref<2x64x64xbf16, #tpu.memory_space<vmem>>, vector<2x64x64xbf16>
    %c0_10 = arith.constant 0 : index
    %c0_11 = arith.constant 0 : index
    %c0_12 = arith.constant 0 : index
    %5 = vector.load %arg5[%c0_10, %c0_11, %c0_12] : memref<2x64x64xbf16, #tpu.memory_space<vmem>>, vector<2x64x64xbf16>
    %c0_13 = arith.constant 0 : index
    %c0_14 = arith.constant 0 : index
    %c0_15 = arith.constant 0 : index
    %6 = vector.load %arg6[%c0_13, %c0_14, %c0_15] : memref<2x64x64xbf16, #tpu.memory_space<vmem>>, vector<2x64x64xbf16>
    %7 = arith.truncf %2 : vector<8x64xf32> to vector<8x64xbf16>
    %8 = vector.shape_cast %7 : vector<8x64xbf16> to vector<1x8x64xbf16>
    %9 = vector.shape_cast %8 : vector<1x8x64xbf16> to vector<1x8x64xbf16>
    %10 = vector.broadcast %9 : vector<1x8x64xbf16> to vector<2x8x64xbf16>
    %11 = arith.truncf %1 : vector<16x64xf32> to vector<16x64xbf16>
    %12 = vector.shape_cast %11 : vector<16x64xbf16> to vector<1x16x64xbf16>
    %13 = vector.shape_cast %12 : vector<1x16x64xbf16> to vector<1x16x64xbf16>
    %14 = vector.broadcast %13 : vector<1x16x64xbf16> to vector<2x16x64xbf16>
    "tpu.trace_start"() <{level = 10 : i32, message = "hqd,hdk->hqk"}> : () -> ()
    %cst = arith.constant dense<0.000000e+00> : vector<2x8x64xf32>
    %15 = tpu.matmul %10, %3, %cst {dimension_numbers = #tpu.dot_dimension_numbers<[2], [1], [1], [2], [0, 0, 0, 1, 1, 2], [0], [0]>} : vector<2x8x64xbf16>, vector<2x64x64xbf16>, vector<2x8x64xf32> -> vector<2x8x64xf32>
    "tpu.trace_stop"() : () -> ()
    "tpu.trace_start"() <{level = 10 : i32, message = "hcd,hdk->hck"}> : () -> ()
    %cst_16 = arith.constant dense<0.000000e+00> : vector<2x16x64xf32>
    %16 = tpu.matmul %14, %4, %cst_16 {dimension_numbers = #tpu.dot_dimension_numbers<[2], [1], [1], [2], [0, 0, 0, 1, 1, 2], [0], [0]>} : vector<2x16x64xbf16>, vector<2x64x64xbf16>, vector<2x16x64xf32> -> vector<2x16x64xf32>
    %cst_17 = arith.constant dense<0.000000e+00> : vector<2x16x64xf32>
    %17 = tpu.matmul %14, %5, %cst_17 {dimension_numbers = #tpu.dot_dimension_numbers<[2], [1], [1], [2], [0, 0, 0, 1, 1, 2], [0], [0]>} : vector<2x16x64xbf16>, vector<2x64x64xbf16>, vector<2x16x64xf32> -> vector<2x16x64xf32>
    "tpu.trace_stop"() : () -> ()
    %18 = arith.truncf %15 : vector<2x8x64xf32> to vector<2x8x64xbf16>
    %19 = arith.truncf %16 : vector<2x16x64xf32> to vector<2x16x64xbf16>
    "tpu.trace_start"() <{level = 10 : i32, message = "hqk,hck->hqc"}> : () -> ()
    %cst_18 = arith.constant dense<0.000000e+00> : vector<2x8x16xf32>
    %20 = tpu.matmul %18, %19, %cst_18 {dimension_numbers = #tpu.dot_dimension_numbers<[2], [2], [1], [1], [0, 0, 0, 1, 1, 1], [0], [0]>} : vector<2x8x64xbf16>, vector<2x16x64xbf16>, vector<2x8x16xf32> -> vector<2x8x16xf32>
    "tpu.trace_stop"() : () -> ()
    %cst_19 = arith.constant 1.250000e-01 : f32
    %21 = vector.broadcast %cst_19 : f32 to vector<2x8x16xf32>
    %22 = arith.mulf %20, %21 : vector<2x8x16xf32>
    %cst_20 = arith.constant dense<0xFF800000> : vector<2x8xf32>
    %23 = vector.multi_reduction <maximumf>, %22, %cst_20 [2] : vector<2x8x16xf32> to vector<2x8xf32>
    %24 = vector.shape_cast %23 : vector<2x8xf32> to vector<2x8x1xf32>
    %25 = vector.broadcast %24 : vector<2x8x1xf32> to vector<2x8x16xf32>
    %26 = arith.subf %22, %25 : vector<2x8x16xf32>
    %27 = math.exp %26 : vector<2x8x16xf32>
    %cst_21 = arith.constant dense<0.000000e+00> : vector<2x8xf32>
    %28 = vector.multi_reduction <add>, %27, %cst_21 [2] : vector<2x8x16xf32> to vector<2x8xf32>
    %29 = vector.shape_cast %28 : vector<2x8xf32> to vector<2x8x1xf32>
    %30 = tpu.reciprocal %29 {approx = true} : vector<2x8x1xf32> -> vector<2x8x1xf32>
    %31 = vector.broadcast %30 : vector<2x8x1xf32> to vector<2x8x16xf32>
    %32 = arith.mulf %27, %31 : vector<2x8x16xf32>
    %33 = arith.truncf %32 : vector<2x8x16xf32> to vector<2x8x16xbf16>
    %34 = arith.truncf %17 : vector<2x16x64xf32> to vector<2x16x64xbf16>
    "tpu.trace_start"() <{level = 10 : i32, message = "hqc,hck->hqk"}> : () -> ()
    %cst_22 = arith.constant dense<0.000000e+00> : vector<2x8x64xf32>
    %35 = tpu.matmul %33, %34, %cst_22 {dimension_numbers = #tpu.dot_dimension_numbers<[2], [1], [1], [2], [0, 0, 0, 1, 1, 2], [0], [0]>} : vector<2x8x16xbf16>, vector<2x16x64xbf16>, vector<2x8x64xf32> -> vector<2x8x64xf32>
    "tpu.trace_stop"() : () -> ()
    %36 = arith.truncf %35 : vector<2x8x64xf32> to vector<2x8x64xbf16>
    "tpu.trace_start"() <{level = 10 : i32, message = "hqk,hkd->hqd"}> : () -> ()
    %cst_23 = arith.constant dense<0.000000e+00> : vector<2x8x64xf32>
    %37 = tpu.matmul %36, %6, %cst_23 {dimension_numbers = #tpu.dot_dimension_numbers<[2], [1], [1], [2], [0, 0, 0, 1, 1, 2], [0], [0]>} : vector<2x8x64xbf16>, vector<2x64x64xbf16>, vector<2x8x64xf32> -> vector<2x8x64xf32>
    "tpu.trace_stop"() : () -> ()
    %cst_24 = arith.constant dense<0.000000e+00> : vector<8x64xf32>
    %38 = vector.multi_reduction <add>, %37, %cst_24 [0] : vector<2x8x64xf32> to vector<8x64xf32>
    %c0_25 = arith.constant 0 : index
    %c0_26 = arith.constant 0 : index
    %c0_27 = arith.constant 0 : index
    %39 = vector.load %arg12[%c0_25, %c0_26, %c0_27] : memref<1x8x64xf32, #tpu.memory_space<vmem>>, vector<1x8x64xf32>
    %40 = vector.shape_cast %39 : vector<1x8x64xf32> to vector<8x64xf32>
    %41 = vector.shape_cast %38 : vector<8x64xf32> to vector<1x8x64xf32>
    tpu.vector_store %arg12[%c0_25, %c0_26, %c0_27], %41 {strides = array<i32>} : memref<1x8x64xf32, #tpu.memory_space<vmem>>, vector<1x8x64xf32>,
    %c0_28 = arith.constant 0 : index
    %c0_29 = arith.constant 0 : index
    %c0_30 = arith.constant 0 : index
    %42 = vector.load %arg7[%c0_28, %c0_29, %c0_30] : memref<2x64x64xbf16, #tpu.memory_space<vmem>>, vector<2x64x64xbf16>
    %c0_31 = arith.constant 0 : index
    %c0_32 = arith.constant 0 : index
    %c0_33 = arith.constant 0 : index
    %43 = vector.load %arg8[%c0_31, %c0_32, %c0_33] : memref<2x64x64xbf16, #tpu.memory_space<vmem>>, vector<2x64x64xbf16>
    %c0_34 = arith.constant 0 : index
    %c0_35 = arith.constant 0 : index
    %c0_36 = arith.constant 0 : index
    %44 = vector.load %arg9[%c0_34, %c0_35, %c0_36] : memref<2x64x64xbf16, #tpu.memory_space<vmem>>, vector<2x64x64xbf16>
    %c0_37 = arith.constant 0 : index
    %c0_38 = arith.constant 0 : index
    %c0_39 = arith.constant 0 : index
    %45 = vector.load %arg10[%c0_37, %c0_38, %c0_39] : memref<2x64x64xbf16, #tpu.memory_space<vmem>>, vector<2x64x64xbf16>
    %46 = arith.truncf %1 : vector<16x64xf32> to vector<16x64xbf16>
    %47 = vector.shape_cast %46 : vector<16x64xbf16> to vector<1x16x64xbf16>
    %48 = vector.shape_cast %47 : vector<1x16x64xbf16> to vector<1x16x64xbf16>
    %49 = vector.broadcast %48 : vector<1x16x64xbf16> to vector<2x16x64xbf16>
    %50 = arith.truncf %38 : vector<8x64xf32> to vector<8x64xbf16>
    %51 = vector.shape_cast %50 : vector<8x64xbf16> to vector<1x8x64xbf16>
    %52 = vector.shape_cast %51 : vector<1x8x64xbf16> to vector<1x8x64xbf16>
    %53 = vector.broadcast %52 : vector<1x8x64xbf16> to vector<2x8x64xbf16>
    "tpu.trace_start"() <{level = 10 : i32, message = "hqd,hdk->hqk"}> : () -> ()
    %cst_40 = arith.constant dense<0.000000e+00> : vector<2x16x64xf32>
    %54 = tpu.matmul %49, %42, %cst_40 {dimension_numbers = #tpu.dot_dimension_numbers<[2], [1], [1], [2], [0, 0, 0, 1, 1, 2], [0], [0]>} : vector<2x16x64xbf16>, vector<2x64x64xbf16>, vector<2x16x64xf32> -> vector<2x16x64xf32>
    "tpu.trace_stop"() : () -> ()
    "tpu.trace_start"() <{level = 10 : i32, message = "hcd,hdk->hck"}> : () -> ()
    %cst_41 = arith.constant dense<0.000000e+00> : vector<2x8x64xf32>
    %55 = tpu.matmul %53, %43, %cst_41 {dimension_numbers = #tpu.dot_dimension_numbers<[2], [1], [1], [2], [0, 0, 0, 1, 1, 2], [0], [0]>} : vector<2x8x64xbf16>, vector<2x64x64xbf16>, vector<2x8x64xf32> -> vector<2x8x64xf32>
    %cst_42 = arith.constant dense<0.000000e+00> : vector<2x8x64xf32>
    %56 = tpu.matmul %53, %44, %cst_42 {dimension_numbers = #tpu.dot_dimension_numbers<[2], [1], [1], [2], [0, 0, 0, 1, 1, 2], [0], [0]>} : vector<2x8x64xbf16>, vector<2x64x64xbf16>, vector<2x8x64xf32> -> vector<2x8x64xf32>
    "tpu.trace_stop"() : () -> ()
    %57 = arith.truncf %54 : vector<2x16x64xf32> to vector<2x16x64xbf16>
    %58 = arith.truncf %55 : vector<2x8x64xf32> to vector<2x8x64xbf16>
    "tpu.trace_start"() <{level = 10 : i32, message = "hqk,hck->hqc"}> : () -> ()
    %cst_43 = arith.constant dense<0.000000e+00> : vector<2x16x8xf32>
    %59 = tpu.matmul %57, %58, %cst_43 {dimension_numbers = #tpu.dot_dimension_numbers<[2], [2], [1], [1], [0, 0, 0, 1, 1, 1], [0], [0]>} : vector<2x16x64xbf16>, vector<2x8x64xbf16>, vector<2x16x8xf32> -> vector<2x16x8xf32>
    "tpu.trace_stop"() : () -> ()
    %cst_44 = arith.constant 1.250000e-01 : f32
    %60 = vector.broadcast %cst_44 : f32 to vector<2x16x8xf32>
    %61 = arith.mulf %59, %60 : vector<2x16x8xf32>
    %cst_45 = arith.constant dense<0xFF800000> : vector<2x16xf32>
    %62 = vector.multi_reduction <maximumf>, %61, %cst_45 [2] : vector<2x16x8xf32> to vector<2x16xf32>
    %63 = vector.shape_cast %62 : vector<2x16xf32> to vector<2x16x1xf32>
    %64 = vector.broadcast %63 : vector<2x16x1xf32> to vector<2x16x8xf32>
    %65 = arith.subf %61, %64 : vector<2x16x8xf32>
    %66 = math.exp %65 : vector<2x16x8xf32>
    %cst_46 = arith.constant dense<0.000000e+00> : vector<2x16xf32>
    %67 = vector.multi_reduction <add>, %66, %cst_46 [2] : vector<2x16x8xf32> to vector<2x16xf32>
    %68 = vector.shape_cast %67 : vector<2x16xf32> to vector<2x16x1xf32>
    %69 = tpu.reciprocal %68 {approx = true} : vector<2x16x1xf32> -> vector<2x16x1xf32>
    %70 = vector.broadcast %69 : vector<2x16x1xf32> to vector<2x16x8xf32>
    %71 = arith.mulf %66, %70 : vector<2x16x8xf32>
    %72 = arith.truncf %71 : vector<2x16x8xf32> to vector<2x16x8xbf16>
    %73 = arith.truncf %56 : vector<2x8x64xf32> to vector<2x8x64xbf16>
    "tpu.trace_start"() <{level = 10 : i32, message = "hqc,hck->hqk"}> : () -> ()
    %cst_47 = arith.constant dense<0.000000e+00> : vector<2x16x64xf32>
    %74 = tpu.matmul %72, %73, %cst_47 {dimension_numbers = #tpu.dot_dimension_numbers<[2], [1], [1], [2], [0, 0, 0, 1, 1, 2], [0], [0]>} : vector<2x16x8xbf16>, vector<2x8x64xbf16>, vector<2x16x64xf32> -> vector<2x16x64xf32>
    "tpu.trace_stop"() : () -> ()
    %75 = arith.truncf %74 : vector<2x16x64xf32> to vector<2x16x64xbf16>
    "tpu.trace_start"() <{level = 10 : i32, message = "hqk,hkd->hqd"}> : () -> ()
    %cst_48 = arith.constant dense<0.000000e+00> : vector<2x16x64xf32>
    %76 = tpu.matmul %75, %45, %cst_48 {dimension_numbers = #tpu.dot_dimension_numbers<[2], [1], [1], [2], [0, 0, 0, 1, 1, 2], [0], [0]>} : vector<2x16x64xbf16>, vector<2x64x64xbf16>, vector<2x16x64xf32> -> vector<2x16x64xf32>
    "tpu.trace_stop"() : () -> ()
    %cst_49 = arith.constant dense<0.000000e+00> : vector<16x64xf32>
    %77 = vector.multi_reduction <add>, %76, %cst_49 [0] : vector<2x16x64xf32> to vector<16x64xf32>
    %c0_50 = arith.constant 0 : index
    %c0_51 = arith.constant 0 : index
    %c0_52 = arith.constant 0 : index
    %78 = vector.load %arg11[%c0_50, %c0_51, %c0_52] : memref<1x16x64xf32, #tpu.memory_space<vmem>>, vector<1x16x64xf32>
    %79 = vector.shape_cast %78 : vector<1x16x64xf32> to vector<16x64xf32>
    %80 = vector.shape_cast %77 : vector<16x64xf32> to vector<1x16x64xf32>
    tpu.vector_store %arg11[%c0_50, %c0_51, %c0_52], %80 {strides = array<i32>} : memref<1x16x64xf32, #tpu.memory_space<vmem>>, vector<1x16x64xf32>,
    return
  }
  func.func @transform_0(%arg0: i32) -> (i32, i32) {
    %c0_i32 = arith.constant 0 : i32
    %c0_i32_0 = arith.constant 0 : i32
    %c0_i32_1 = arith.constant 0 : i32
    return %c0_i32, %c0_i32_0 : i32, i32
  }
  func.func @transform_1(%arg0: i32) -> (i32, i32, i32) {
    %c0_i32 = arith.constant 0 : i32
    %c0_i32_0 = arith.constant 0 : i32
    %c0_i32_1 = arith.constant 0 : i32
    return %arg0, %c0_i32, %c0_i32_0 : i32, i32, i32
  }
  func.func @transform_2(%arg0: i32) -> (i32, i32, i32) {
    %c0_i32 = arith.constant 0 : i32
    %c0_i32_0 = arith.constant 0 : i32
    %c0_i32_1 = arith.constant 0 : i32
    %c0_i32_2 = arith.constant 0 : i32
    return %c0_i32, %c0_i32_0, %c0_i32_1 : i32, i32, i32
  }
  func.func @transform_3(%arg0: i32) -> (i32, i32, i32) {
    %c0_i32 = arith.constant 0 : i32
    %c0_i32_0 = arith.constant 0 : i32
    %c0_i32_1 = arith.constant 0 : i32
    %c0_i32_2 = arith.constant 0 : i32
    return %c0_i32, %c0_i32_0, %c0_i32_1 : i32, i32, i32
  }
  func.func @transform_4(%arg0: i32) -> (i32, i32, i32) {
    %c0_i32 = arith.constant 0 : i32
    %c0_i32_0 = arith.constant 0 : i32
    %c0_i32_1 = arith.constant 0 : i32
    %c0_i32_2 = arith.constant 0 : i32
    return %c0_i32, %c0_i32_0, %c0_i32_1 : i32, i32, i32
  }
  func.func @transform_5(%arg0: i32) -> (i32, i32, i32) {
    %c0_i32 = arith.constant 0 : i32
    %c0_i32_0 = arith.constant 0 : i32
    %c0_i32_1 = arith.constant 0 : i32
    %c0_i32_2 = arith.constant 0 : i32
    return %c0_i32, %c0_i32_0, %c0_i32_1 : i32, i32, i32
  }
  func.func @transform_6(%arg0: i32) -> (i32, i32, i32) {
    %c0_i32 = arith.constant 0 : i32
    %c0_i32_0 = arith.constant 0 : i32
    %c0_i32_1 = arith.constant 0 : i32
    %c0_i32_2 = arith.constant 0 : i32
    return %c0_i32, %c0_i32_0, %c0_i32_1 : i32, i32, i32
  }
  func.func @transform_7(%arg0: i32) -> (i32, i32, i32) {
    %c0_i32 = arith.constant 0 : i32
    %c0_i32_0 = arith.constant 0 : i32
    %c0_i32_1 = arith.constant 0 : i32
    %c0_i32_2 = arith.constant 0 : i32
    return %c0_i32, %c0_i32_0, %c0_i32_1 : i32, i32, i32
  }
  func.func @transform_8(%arg0: i32) -> (i32, i32, i32) {
    %c0_i32 = arith.constant 0 : i32
    %c0_i32_0 = arith.constant 0 : i32
    %c0_i32_1 = arith.constant 0 : i32
    %c0_i32_2 = arith.constant 0 : i32
    return %c0_i32, %c0_i32_0, %c0_i32_1 : i32, i32, i32
  }
  func.func @transform_9(%arg0: i32) -> (i32, i32, i32) {
    %c0_i32 = arith.constant 0 : i32
    %c0_i32_0 = arith.constant 0 : i32
    %c0_i32_1 = arith.constant 0 : i32
    %c0_i32_2 = arith.constant 0 : i32
    return %c0_i32, %c0_i32_0, %c0_i32_1 : i32, i32, i32
  }
  func.func @transform_10(%arg0: i32) -> (i32, i32, i32) {
    %c0_i32 = arith.constant 0 : i32
    %c0_i32_0 = arith.constant 0 : i32
    %c0_i32_1 = arith.constant 0 : i32
    return %arg0, %c0_i32, %c0_i32_0 : i32, i32, i32
  }
  func.func @transform_11(%arg0: i32) -> (i32, i32, i32) {
    %c0_i32 = arith.constant 0 : i32
    %c0_i32_0 = arith.constant 0 : i32
    %c0_i32_1 = arith.constant 0 : i32
    return %arg0, %c0_i32, %c0_i32_0 : i32, i32, i32
  }
}

</mosaic_0001>

<bundles_post_ra>
// kernel: tpu_custom_call.1
= control target key start
LH: loop header
LB: loop body
LE: loop exit
PB: predicated region body
PF: predicated region fallthrough
CT: control target
= control target key end

     0   :  { %s4241_s0 = inlined_call_operand.hbm [shape: f32[8,64], index: 0, kind: input, shape index: {}]   ;;  %s4242_s1 = inlined_call_operand.hbm [shape: f32[2,16,64], index: 1, kind: input, shape index: {}]   ;;  %s4243_s2 = inlined_call_operand.hbm [shape: bf16[2,64,64], index: 2, kind: input, shape index: {}]   ;;  %s4244_s3 = inlined_call_operand.hbm [shape: bf16[2,64,64], index: 3, kind: input, shape index: {}]   ;;  %s4245_s4 = inlined_call_operand.hbm [shape: bf16[2,64,64], index: 4, kind: input, shape index: {}]   ;;  %s4246_s5 = inlined_call_operand.hbm [shape: bf16[2,64,64], index: 5, kind: input, shape index: {}]   ;;  %s4247_s6 = inlined_call_operand.hbm [shape: bf16[2,64,64], index: 6, kind: input, shape index: {}]   ;;  %s4248_s7 = inlined_call_operand.hbm [shape: bf16[2,64,64], index: 7, kind: input, shape index: {}]   ;;  %s4249_s8 = inlined_call_operand.hbm [shape: bf16[2,64,64], index: 8, kind: input, shape index: {}]   ;;  %s4250_s9 = inlined_call_operand.hbm [shape: bf16[2,64,64], index: 9, kind: input, shape index: {}]   ;;  %s4251_s10 = inlined_call_operand.hbm [shape: f32[2,16,64], index: 10, kind: output, shape index: {0}]   ;;  %s4252_s11 = inlined_call_operand.hbm [shape: f32[2,8,64], index: 11, kind: output, shape index: {1}]  }
   0x1   :  { %4259 = sst [smem:[#allocation32_spill]] %s4241_s0 }
   0x2   :  { %4260 = sst [smem:[#allocation33_spill]] %s4243_s2 }
   0x3   :  { %4261 = sst [smem:[#allocation34_spill]] %s4251_s10 }
   0x4   :  { %4262 = sst [smem:[#allocation35_spill]] %s4252_s11 }
   0x5   :  { %17 = vsyncpa [#allocation3], 0 }
   0x6   :  { %18 = vsyncpa [#allocation6], 0 }
   0x7   :  { %20 = vsyncpa [#allocation6 + $0x1], 0 }
   0x8   :  { %21 = vsyncpa [#allocation9], 0 }
   0x9   :  { %22 = vsyncpa [#allocation12], 0 }
   0xa   :  { %23 = vsyncpa [#allocation15], 0 }
   0xb   :  { %24 = vsyncpa [#allocation18], 0 }
   0xc   :  { %25 = vsyncpa [#allocation4], 0 }
   0xd   :  { %27 = vsyncpa [#allocation4 + $0x1], 0 }
   0xe   :  { %28 = vsyncpa [#allocation21], 0 }
   0xf   :  { %30 = vsyncpa [#allocation21 + $0x1], 0  ;;  %s3617_s17 = smov 0   ;;  %s3619_s18 = smov 0  }
  0x10   :  { %s3621_s19 = smov 0   ;;  %s3623_s20 = smov 0  }
  0x11 LB: > { %s3537_s21 = smov [#allocation7]   ;;  %s3638_s23 = sadd.s32 4294967295, %s3535_s20   ;;  %s3535_s20 = sphi %s3623_s20, %s4296_s20   ;;  %s3531_s19 = sphi %s3621_s19, %s4295_s19   ;;  %s3527_s18 = sphi %s3619_s18, %s4294_s18   ;;  %s3523_s17 = sphi %s3617_s17, %s4293_s17  }
  0x12   : > { %s331_s22 = sshll.u32 %s3537_s21, 4  ;;  %p2433_p0 = scmp.ge.s32.totalorder %s3535_s20, 1  ;;  %s3643_s22 = int_to_ptr.vmem [resolvable:$true] %s331_s22 }
  0x13   : > { %p4256_p1 = scmp.eq.s32.totalorder %s3638_s23, 0  ;;  %p308_p2 = scmp.lt.s32.totalorder %s3535_s20, 3 }
  0x14   : > { %s3538_s25 = smov [#allocation8]   ;;  %s3539_s28 = smov [#allocation11]  }
  0x15   : > { %p3645_p3 = pnand %p2433_p0, %p308_p2  ;;  %s344_s26 = sshll.u32 %s3538_s25, 4  ;;  %s3658_s26 = int_to_ptr.vmem [resolvable:$true] %s344_s26 }
  0x16   : > { %s370_s29 = sshll.u32 %s3539_s28, 4  ;;  %s4266_s2 = sld [smem:[#allocation33_spill]]  ;;  %s3660_s29 = int_to_ptr.vmem [resolvable:$true] %s370_s29 }
  0x17   : > { %s4263_s24 = scalar_select %p3645_p3, 1, 0 }
  0x18   : > { %p2935_p5 = pneg %p3645_p3 }
  0x19   : > { %4264 = sst [smem:[#allocation31_spill]] %s4263_s24 }
  0x1a   : > { %p3654_p6 = pnand %p2935_p5, %p4256_p1 }
  0x1c   : > { %s3131_s13 = scalar_lea.hbm %s4266_s2, 1024  ;;  %p3670_p8 = pneg %p3654_p6 }
  0x1d   : > { %p3132_p7 = scmp.ne.s32.totalorder %s4266_s2, %s3131_s13  ;;  %p3138_p11 = scmp.lt.u32.totalorder %s3131_s13, %s4266_s2 }
  0x1f   : > { %p3134_p9 = pnand %p3670_p8, %p3132_p7 }
  0x21   : > { %p3135_p10 = pneg %p3134_p9 }
  0x23   : > { %p3140_p12 = pnand %p3138_p11, %p3135_p10 }
  0x25   : > { %3143 = shalt.err (!%p3140_p12)
}
  0x26   : > { %s3144_s28 = scalar_lea.vmem %s3643_s22, 1024  ;;  %p3152_p5 = scmp.lt.s32.totalorder %s3643_s22, %s3643_s22 }
  0x27   : > { %p3145_p13 = scmp.ne.s32.totalorder %s3643_s22, %s3144_s28  ;;  %p3153_p4 = scmp.lt.s32.totalorder %s3144_s28, %s3144_s28 }
  0x29   : > { %p3147_p0 = pnand %p3145_p13, %p3670_p8  ;;  %p3154_p7 = por %p3153_p4, %p3152_p5 }
  0x2b   : > { %p3148_p2 = pneg %p3147_p0 }
  0x2d   : > { %p3155_p9 = pnand %p3154_p7, %p3148_p2 }
  0x2f   : > { %3158 = shalt.err (!%p3155_p9)
}
  0x30   : > { %s3540_s30 = smov 64   ;;  %s3541_s12 = smov 4  }
  0x31   : > { %2941 = dma.hbm_to_vmem [thread:$0]  (!%p3654_p6), %s4266_s2, 1024, %s3643_s22, [#allocation6], %s3540_s30, %s3540_s30, %s3541_s12  }
  0x32   : > { %s3159_s25 = scalar_lea.hbm %s4244_s3, 1024 }
  0x33   : > { %p3160_p4 = scmp.ne.s32.totalorder %s4244_s3, %s3159_s25  ;;  %p3166_p12 = scmp.lt.u32.totalorder %s3159_s25, %s4244_s3 }
  0x35   : > { %p3162_p10 = pnand %p3160_p4, %p3670_p8 }
  0x37   : > { %p3163_p11 = pneg %p3162_p10 }
  0x39   : > { %p3168_p13 = pnand %p3166_p12, %p3163_p11 }
  0x3b   : > { %3171 = shalt.err (!%p3168_p13)
}
  0x3c   : > { %s3172_s22 = scalar_lea.vmem %s3658_s26, 1024  ;;  %p3180_p7 = scmp.lt.s32.totalorder %s3658_s26, %s3658_s26 }
  0x3d   : > { %p3173_p0 = scmp.ne.s32.totalorder %s3658_s26, %s3172_s22  ;;  %p3181_p9 = scmp.lt.s32.totalorder %s3172_s22, %s3172_s22 }
  0x3f   : > { %p3175_p2 = pnand %p3173_p0, %p3670_p8  ;;  %p3182_p4 = por %p3181_p9, %p3180_p7 }
  0x41   : > { %p3176_p5 = pneg %p3175_p2 }
  0x43   : > { %p3183_p10 = pnand %p3182_p4, %p3176_p5 }
  0x45   : > { %3186 = shalt.err (!%p3183_p10)
}
  0x46   : > { %2944 = dma.hbm_to_vmem [thread:$0]  (!%p3654_p6), %s4244_s3, 1024, %s3658_s26, [#allocation9], %s3540_s30, %s3540_s30, %s3541_s12  }
  0x47   : > { %s3187_s14 = scalar_lea.hbm %s4246_s5, 1024 }
  0x48   : > { %p3188_p11 = scmp.ne.s32.totalorder %s4246_s5, %s3187_s14  ;;  %p3194_p0 = scmp.lt.u32.totalorder %s3187_s14, %s4246_s5 }
  0x4a   : > { %p3190_p12 = pnand %p3188_p11, %p3670_p8 }
  0x4c   : > { %p3191_p13 = pneg %p3190_p12 }
  0x4e   : > { %p3196_p2 = pnand %p3194_p0, %p3191_p13 }
  0x50   : > { %3199 = shalt.err (!%p3196_p2)
}
  0x51   : > { %s3200_s26 = scalar_lea.vmem %s3660_s29, 1024  ;;  %p3208_p4 = scmp.lt.s32.totalorder %s3660_s29, %s3660_s29 }
  0x52   : > { %p3201_p5 = scmp.ne.s32.totalorder %s3660_s29, %s3200_s26  ;;  %p3209_p10 = scmp.lt.s32.totalorder %s3200_s26, %s3200_s26 }
  0x54   : > { %p3203_p7 = pnand %p3201_p5, %p3670_p8  ;;  %p3210_p11 = por %p3209_p10, %p3208_p4 }
  0x56   : > { %p3204_p9 = pneg %p3203_p7 }
  0x58   : > { %p3211_p12 = pnand %p3210_p11, %p3204_p9 }
  0x5a   : > { %3214 = shalt.err (!%p3211_p12)
}
  0x5b   : > { %2950 = dma.hbm_to_vmem [thread:$0]  (!%p3654_p6), %s4246_s5, 1024, %s3660_s29, [#allocation12], %s3540_s30, %s3540_s30, %s3541_s12  }
  0x5c   : > { %s3542_s11 = smov [#allocation14]   ;;  %s3543_s13 = smov [#allocation2]  }
  0x5d   : > { %s396_s24 = sshll.u32 %s3542_s11, 4  ;;  %s321_s14 = sshll.u32 %s3543_s13, 4  ;;  %s397_s24 = int_to_ptr.vmem [resolvable:$true] %s396_s24  ;;  %s322_s14 = int_to_ptr.vmem [resolvable:$true] %s321_s14 }
  0x5e   : > { %s3215_s25 = scalar_lea.hbm %s4248_s7, 1024 }
  0x5f   : > { %p3216_p13 = scmp.ne.s32.totalorder %s4248_s7, %s3215_s25  ;;  %p3222_p5 = scmp.lt.u32.totalorder %s3215_s25, %s4248_s7 }
  0x61   : > { %p3218_p0 = pnand %p3216_p13, %p3670_p8 }
  0x63   : > { %p3219_p2 = pneg %p3218_p0 }
  0x65   : > { %p3224_p7 = pnand %p3222_p5, %p3219_p2 }
  0x67   : > { %3227 = shalt.err (!%p3224_p7)
}
  0x68   : > { %s3228_s29 = scalar_lea.vmem %s397_s24, 1024  ;;  %p3236_p11 = scmp.lt.s32.totalorder %s397_s24, %s397_s24 }
  0x69   : > { %p3229_p9 = scmp.ne.s32.totalorder %s397_s24, %s3228_s29  ;;  %p3237_p12 = scmp.lt.s32.totalorder %s3228_s29, %s3228_s29 }
  0x6b   : > { %p3231_p4 = pnand %p3229_p9, %p3670_p8  ;;  %p3238_p1 = por %p3237_p12, %p3236_p11 }
  0x6d   : > { %p3232_p10 = pneg %p3231_p4 }
  0x6f   : > { %p3239_p3 = pnand %p3238_p1, %p3232_p10 }
  0x71   : > { %3242 = shalt.err (!%p3239_p3)
}
  0x72   : > { %2956 = dma.hbm_to_vmem [thread:$0]  (!%p3654_p6), %s4248_s7, 1024, %s397_s24, [#allocation15], %s3540_s30, %s3540_s30, %s3541_s12  }
  0x73   : > { %s4268_s0 = sld [smem:[#allocation32_spill]] }
  0x79   : > { %s3243_s15 = scalar_lea.hbm %s4268_s0, 128 }
  0x7a   : > { %p3244_p1 = scmp.ne.s32.totalorder %s4268_s0, %s3243_s15  ;;  %p3250_p0 = scmp.lt.u32.totalorder %s3243_s15, %s4268_s0 }
  0x7c   : > { %p3246_p3 = pnand %p3244_p1, %p3670_p8 }
  0x7e   : > { %p3247_p13 = pneg %p3246_p3 }
  0x80   : > { %p3252_p2 = pnand %p3250_p0, %p3247_p13 }
  0x82   : > { %3255 = shalt.err (!%p3252_p2)
}
  0x83   : > { %s3256_s22 = scalar_lea.vmem %s322_s14, 128  ;;  %p3264_p4 = scmp.lt.s32.totalorder %s322_s14, %s322_s14 }
  0x84   : > { %p3257_p5 = scmp.ne.s32.totalorder %s322_s14, %s3256_s22  ;;  %p3265_p10 = scmp.lt.s32.totalorder %s3256_s22, %s3256_s22 }
  0x86   : > { %p3259_p7 = pnand %p3257_p5, %p3670_p8  ;;  %p3266_p11 = por %p3265_p10, %p3264_p4 }
  0x88   : > { %p3260_p9 = pneg %p3259_p7 }
  0x8a   : > { %p3267_p12 = pnand %p3266_p11, %p3260_p9 }
  0x8c   : > { %3270 = shalt.err (!%p3267_p12)
}
  0x8d   : > { %2938 = dma.hbm_to_vmem [thread:$0]  (!%p3654_p6), %s4268_s0, 128, %s322_s14, [#allocation3]  }
  0x8e   : > { %s3544_s2 = smov [#allocation10]   ;;  %s3545_s11 = smov [#allocation13]  }
  0x8f   : > { %s357_s10 = sshll.u32 %s3544_s2, 4  ;;  %s383_s13 = sshll.u32 %s3545_s11, 4  ;;  %s358_s10 = int_to_ptr.vmem [resolvable:$true] %s357_s10  ;;  %s384_s13 = int_to_ptr.vmem [resolvable:$true] %s383_s13 }
  0x90   : > { %s3271_s25 = scalar_lea.hbm %s4245_s4, 1024 }
  0x91   : > { %p3272_p1 = scmp.ne.s32.totalorder %s4245_s4, %s3271_s25  ;;  %p3278_p0 = scmp.lt.u32.totalorder %s3271_s25, %s4245_s4 }
  0x93   : > { %p3274_p3 = pnand %p3272_p1, %p3670_p8 }
  0x95   : > { %p3275_p13 = pneg %p3274_p3 }
  0x97   : > { %p3280_p2 = pnand %p3278_p0, %p3275_p13 }
  0x99   : > { %3283 = shalt.err (!%p3280_p2)
}
  0x9a   : > { %s3284_s14 = scalar_lea.vmem %s358_s10, 1024  ;;  %p3292_p4 = scmp.lt.s32.totalorder %s358_s10, %s358_s10 }
  0x9b   : > { %p3285_p5 = scmp.ne.s32.totalorder %s358_s10, %s3284_s14  ;;  %p3293_p10 = scmp.lt.s32.totalorder %s3284_s14, %s3284_s14 }
  0x9d   : > { %p3287_p7 = pnand %p3285_p5, %p3670_p8  ;;  %p3294_p11 = por %p3293_p10, %p3292_p4 }
  0x9f   : > { %p3288_p9 = pneg %p3287_p7 }
  0xa1   : > { %p3295_p12 = pnand %p3294_p11, %p3288_p9 }
  0xa3   : > { %3298 = shalt.err (!%p3295_p12)
}
  0xa4   : > { %2947 = dma.hbm_to_vmem [thread:$0]  (!%p3654_p6), %s4245_s4, 1024, %s358_s10, [#allocation9], %s3540_s30, %s3540_s30, %s3541_s12  }
  0xa5   : > { %s3299_s21 = scalar_lea.hbm %s4247_s6, 1024 }
  0xa6   : > { %p3300_p1 = scmp.ne.s32.totalorder %s4247_s6, %s3299_s21  ;;  %p3306_p0 = scmp.lt.u32.totalorder %s3299_s21, %s4247_s6 }
  0xa8   : > { %p3302_p3 = pnand %p3300_p1, %p3670_p8 }
  0xaa   : > { %p3303_p13 = pneg %p3302_p3 }
  0xac   : > { %p3308_p2 = pnand %p3306_p0, %p3303_p13 }
  0xae   : > { %3311 = shalt.err (!%p3308_p2)
}
  0xaf   : > { %s3312_s24 = scalar_lea.vmem %s384_s13, 1024  ;;  %p3320_p4 = scmp.lt.s32.totalorder %s384_s13, %s384_s13 }
  0xb0   : > { %p3313_p5 = scmp.ne.s32.totalorder %s384_s13, %s3312_s24  ;;  %p3321_p10 = scmp.lt.s32.totalorder %s3312_s24, %s3312_s24 }
  0xb2   : > { %p3315_p7 = pnand %p3313_p5, %p3670_p8  ;;  %p3322_p11 = por %p3321_p10, %p3320_p4 }
  0xb4   : > { %p3316_p9 = pneg %p3315_p7 }
  0xb6   : > { %p3323_p12 = pnand %p3322_p11, %p3316_p9 }
  0xb8   : > { %3326 = shalt.err (!%p3323_p12)
}
  0xb9   : > { %2953 = dma.hbm_to_vmem [thread:$0]  (!%p3654_p6), %s4247_s6, 1024, %s384_s13, [#allocation12], %s3540_s30, %s3540_s30, %s3541_s12  }
  0xba   : > { %s3546_s29 = smov [#allocation16]   ;;  %s3547_s11 = smov [#allocation17]  }
  0xbb   : > { %s409_s2 = sshll.u32 %s3546_s29, 4  ;;  %s422_s15 = sshll.u32 %s3547_s11, 4  ;;  %s410_s2 = int_to_ptr.vmem [resolvable:$true] %s409_s2  ;;  %s423_s15 = int_to_ptr.vmem [resolvable:$true] %s422_s15 }
  0xbc   : > { %s3327_s28 = scalar_lea.hbm %s4249_s8, 1024 }
  0xbd   : > { %p3328_p1 = scmp.ne.s32.totalorder %s4249_s8, %s3327_s28  ;;  %p3334_p0 = scmp.lt.u32.totalorder %s3327_s28, %s4249_s8 }
  0xbf   : > { %p3330_p3 = pnand %p3328_p1, %p3670_p8 }
  0xc1   : > { %p3331_p13 = pneg %p3330_p3 }
  0xc3   : > { %p3336_p2 = pnand %p3334_p0, %p3331_p13 }
  0xc5   : > { %3339 = shalt.err (!%p3336_p2)
}
  0xc6   : > { %s3340_s13 = scalar_lea.vmem %s410_s2, 1024  ;;  %p3348_p4 = scmp.lt.s32.totalorder %s410_s2, %s410_s2 }
  0xc7   : > { %p3341_p5 = scmp.ne.s32.totalorder %s410_s2, %s3340_s13  ;;  %p3349_p10 = scmp.lt.s32.totalorder %s3340_s13, %s3340_s13 }
  0xc9   : > { %p3343_p7 = pnand %p3341_p5, %p3670_p8  ;;  %p3350_p11 = por %p3349_p10, %p3348_p4 }
  0xcb   : > { %p3344_p9 = pneg %p3343_p7 }
  0xcd   : > { %p3351_p12 = pnand %p3350_p11, %p3344_p9 }
  0xcf   : > { %3354 = shalt.err (!%p3351_p12)
}
  0xd0   : > { %2959 = dma.hbm_to_vmem [thread:$0]  (!%p3654_p6), %s4249_s8, 1024, %s410_s2, [#allocation15], %s3540_s30, %s3540_s30, %s3541_s12  }
  0xd1   : > { %s3355_s25 = scalar_lea.hbm %s4250_s9, 1024 }
  0xd2   : > { %p3356_p1 = scmp.ne.s32.totalorder %s4250_s9, %s3355_s25  ;;  %p3362_p0 = scmp.lt.u32.totalorder %s3355_s25, %s4250_s9 }
  0xd4   : > { %p3358_p3 = pnand %p3356_p1, %p3670_p8 }
  0xd6   : > { %p3359_p13 = pneg %p3358_p3 }
  0xd8   : > { %p3364_p2 = pnand %p3362_p0, %p3359_p13 }
  0xda   : > { %3367 = shalt.err (!%p3364_p2)
}
  0xdb   : > { %s3368_s10 = scalar_lea.vmem %s423_s15, 1024  ;;  %p3376_p4 = scmp.lt.s32.totalorder %s423_s15, %s423_s15 }
  0xdc   : > { %p3369_p5 = scmp.ne.s32.totalorder %s423_s15, %s3368_s10  ;;  %p3377_p10 = scmp.lt.s32.totalorder %s3368_s10, %s3368_s10 }
  0xde   : > { %p3371_p7 = pnand %p3369_p5, %p3670_p8  ;;  %p3378_p11 = por %p3377_p10, %p3376_p4 }
  0xe0   : > { %p3372_p9 = pneg %p3371_p7 }
  0xe2   : > { %p3379_p12 = pnand %p3378_p11, %p3372_p9 }
  0xe4   : > { %3382 = shalt.err (!%p3379_p12)
}
  0xe5   : > { %2962 = dma.hbm_to_vmem [thread:$0]  (!%p3654_p6), %s4250_s9, 1024, %s423_s15, [#allocation18], %s3540_s30, %s3540_s30, %s3541_s12  }
  0xe6   : > { %s2432_s27 = sadd.s32 4294967294, %s3535_s20   ;;  %s3871_s16 = sadd.s32 1, %s3535_s20  }
  0xe7   : > { %s64_s14 = sadd.s32 1, %s3531_s19  ;;  %s61_s29 = ssub.s32 %s3535_s20, %s3871_s16 }
  0xe8   : > { %p71_p8 = scmp.ne.s32.totalorder %s3531_s19, %s3527_s18  ;;  %p62_p1 = scmp.eq.s32.totalorder %s61_s29, 0 }
  0xe9   : > { %p72_p3 = scmp.eq.s32.totalorder %s3535_s20, 0  ;;  %p77_p13 = scmp.ne.s32.totalorder %s3527_s18, %s3523_s17 }
  0xea   : > { %p269_p0 = scmp.eq.s32.totalorder %s3638_s23, 1  ;;  %p4269_p5 = scmp.eq.s32.totalorder %s3638_s23, 0 }
  0xeb   : > { %s3883_s11 = scalar_select %p62_p1, %s3531_s19, %s64_s14  }
  0xec   : > { %p73_p2 = por %p72_p3, %p71_p8  ;;  %p3887_p7 = por %p4269_p5, %p77_p13 }
  0xed   : > { %p3891_p6 = por %p269_p0, %p71_p8  ;;  %p275_p9 = scmp.eq.s32.totalorder %s2432_s27, 1 }
  0xee   : > { %p2983_p4 = scmp.lt.s32.totalorder %s3535_s20, 2  ;;  %s436_s15 = sand.u32 1, %s3535_s20  }
  0xef   : > { %s4271_s12 = scalar_select %p3891_p6, 1, 0 }
  0xf0   : > { %p3897_p10 = por %p275_p9, %p77_p13  ;;  %s438_s25 = sand.u32 1, %s3531_s19  }
  0xf1   : > { %s2555_s28 = sshll.u32 %s3535_s20, 8  ;;  %s2444_s26 = sshll.u32 %s438_s25, 4 }
  0xf2   : > { %s4272_s21 = scalar_select %p3897_p10, 1, 0 }
  0xf3   : > { %s3906_s10 = scalar_lea.hbm %s4242_s1, %s2555_s28  ;;  %p3908_p11 = pnand %p2983_p4, %p73_p2 }
  0xf4   : > { %s440_s13 = scalar_lea.vmem [#allocation5], %s2444_s26  ;;  %s3914_s14 = scalar_lea.sflag [#allocation6], %s436_s15 }
  0xf5   : > { %s447_s27 = sshll.u32 %s440_s13, 4  ;;  %s3383_s29 = scalar_lea.hbm %s3906_s10, 256  ;;  %s3912_s27 = int_to_ptr.vmem [resolvable:$true] %s447_s27 }
  0xf6   : > { %p3384_p12 = scmp.ne.s32.totalorder %s3906_s10, %s3383_s29  ;;  %p3385_p8 = pneg %p3908_p11 }
  0xf7   : > { %s3388_s22 = scalar_lea.hbm %s4242_s1, 512  ;;  %p3389_p13 = scmp.lt.u32.totalorder %s3906_s10, %s4242_s1 }
  0xf8   : > { %p3386_p1 = pnand %p3385_p8, %p3384_p12  ;;  %p3390_p0 = scmp.lt.u32.totalorder %s3388_s22, %s3383_s29 }
  0xf9   : > { %p3392_p5 = scmp.lt.u32.totalorder %s3383_s29, %s3906_s10 }
  0xfa   : > { %p3387_p3 = pneg %p3386_p1  ;;  %p3391_p2 = por %p3390_p0, %p3389_p13 }
  0xfc   : > { %p3393_p9 = por %p3392_p5, %p3391_p2 }
  0xfe   : > { %p3394_p4 = pnand %p3393_p9, %p3387_p3 }
 0x100   : > { %3397 = shalt.err (!%p3394_p4)
}
 0x101   : > { %s3398_s15 = scalar_lea.vmem %s3912_s27, 256  ;;  %s3548_s26 = smov [#allocation5]  }
 0x102   : > { %p3399_p12 = scmp.ne.s32.totalorder %s3912_s27, %s3398_s15  ;;  %s3403_s13 = sshll.u32 %s3548_s26, 4  ;;  %s3404_s13 = int_to_ptr.vmem [resolvable:$false] %s3403_s13 }
 0x103   : > { %s3405_s0 = scalar_lea.vmem %s3404_s13, 512  ;;  %p3406_p6 = scmp.lt.s32.totalorder %s3912_s27, %s3404_s13 }
 0x104   : > { %p3401_p1 = pnand %p3399_p12, %p3385_p8  ;;  %p3407_p13 = scmp.lt.s32.totalorder %s3405_s0, %s3398_s15 }
 0x106   : > { %p3402_p10 = pneg %p3401_p1  ;;  %p3408_p0 = por %p3407_p13, %p3406_p6 }
 0x108   : > { %p3409_p2 = pnand %p3408_p0, %p3402_p10 }
 0x10a   : > { %3412 = shalt.err (!%p3409_p2)
}
 0x10b   : > { %s3549_s29 = smov 128   ;;  %s3550_s25 = smov 8  }
 0x10c   : > { %2966 = dma.hbm_to_vmem [thread:$0]  (!%p3908_p11), %s3906_s10, 256, %s3912_s27, %s3914_s14, %s3549_s29, %s3549_s29, %s3550_s25  }
 0x10d   : > { %s4274_s28 = sld [smem:[#allocation31_spill]] }
 0x113   : > { %p4275_p8 = scmp.ne.s32.totalorder %s4274_s28, 0 }
 0x114   : > { %p4276_p3 = scmp.eq.s32.totalorder (!%p4275_p8), %s3638_s23, 0 }
 0x115   : > { %459 = sbr.rel (%p4275_p8) target bundleno = 2733 (0xaad), region = 60 }
 0x11c   : > { %3486 = dma.done.wait (%p4276_p3), [#allocation3], 128   ;;  %p4277_p5 = pmov %p4276_p3 }
 0x11d   : > { %s465_s22 = sand.u32 1, %s3638_s23   ;;  %s3950_s24 = sand.u32 1, %s3527_s18  }
 0x11e   : > { %3488 = vsyncadd (%p4277_p5), [#allocation3], 4294967168  ;;  %s2449_s15 = sshll.u32 %s3950_s24, 4  ;;  %s466_s2 = scalar_lea.sflag [#allocation6], %s465_s22 }
 0x11f   : > { %s3955_s10 = scalar_lea.vmem [#allocation5], %s2449_s15 }
 0x120   : > { %3490 = dma.done.wait (%p3887_p7), %s466_s2, 256  }
 0x121   : > { %3492 = vsyncadd (%p3887_p7), %s466_s2, 4294967040  ;;  %p4278_p6 = pmov %p4276_p3 }
 0x122   : > { %p4279_p10 = pmov %p4276_p3 }
 0x123   : > { %3494 = dma.done.wait (%p4278_p6), [#allocation6], 1024  }
 0x124   : > { %3496 = vsyncadd (%p4279_p10), [#allocation6], 4294966272  ;;  %p4280_p11 = pmov %p4276_p3 }
 0x125   : > { %p4281_p9 = pmov %p4276_p3 }
 0x126   : > { %3498 = dma.done.wait (%p4280_p11), [#allocation9], 2048  }
 0x127   : > { %3500 = vsyncadd (%p4281_p9), [#allocation9], 4294965248  ;;  %p4282_p4 = pmov %p4276_p3 }
 0x128   : > { %p4283_p12 = pmov %p4276_p3 }
 0x129   : > { %3502 = dma.done.wait (%p4282_p4), [#allocation12], 2048  }
 0x12a   : > { %3504 = vsyncadd (%p4283_p12), [#allocation12], 4294965248  ;;  %p4284_p7 = pmov %p4276_p3 }
 0x12b   : > { %p4285_p1 = pmov %p4276_p3 }
 0x12c   : > { %3506 = dma.done.wait (%p4284_p7), [#allocation15], 2048  }
 0x12d   : > { %3508 = vsyncadd (%p4285_p1), [#allocation15], 4294965248  ;;  %p4286_p13 = pmov %p4285_p1 }
 0x12e   : > { %p4287_p0 = pmov %p4285_p1 }
 0x12f   : > { %3510 = dma.done.wait (%p4286_p13), [#allocation18], 1024  }
 0x130   : > { %3512 = vsyncadd (%p4287_p0), [#allocation18], 4294966272  ;;  %v3551_v0 = vmov 0.0   ;;  %vm3552_vm0 = vmmov 0   ;;  %v3043_v1 = vld [vmem:[#allocation7] sm:$0xff]   ;;  %v3045_v3 = vld [vmem:[#allocation7 + $0x8] sm:$0xff]  }
 0x131   : > { %2653 = vmatprep.subr.bf16.mxu0 %v3551_v0  ;;  %2665 = vmatprep.subr.bf16.mxu1 %v3551_v0  ;;  %v3044_v2 = vld [vmem:[#allocation7 + $0x20] sm:$0xff]   ;;  %v3046_v4 = vld [vmem:[#allocation7 + $0x28] sm:$0xff]   ;;  %v3047_v5 = vld [vmem:[#allocation7 + $0x10] sm:$0xff]   ;;  %vm639_vm1 = vcmask 523264   ;;  %vm1108_vm2 = vcmask 130048   ;;  %s2459_s30 = sshll.u32 %s3950_s24, 3 }
 0x132   : > { %2661 = vmatprep.mubr.msk.bf16.mxu0 %vm3552_vm0, %v3551_v0  ;;  %2673 = vmatprep.mubr.msk.bf16.mxu1 %vm3552_vm0, %v3551_v0  ;;  %v3048_v6 = vld [vmem:[#allocation7 + $0x30] sm:$0xff]   ;;  %v3049_v7 = vld [vmem:[#allocation7 + $0x18] sm:$0xff]   ;;  %v3051_v11 = vld [vmem:[#allocation8] sm:$0xff]   ;;  %s4100_s27 = scalar_lea.vmem [#allocation20], %s2459_s30  ;;  %vm1969_vm3 = vcmask 1043456   ;;  %vm1917_vm4 = vcmask 64512  }
 0x133   : > { %2654 = vmatpush3.bf16.msra.mxu0 %v3043_v1  ;;  %2666 = vmatpush3.bf16.msra.mxu1 %v3044_v2  ;;  %v548_v8 = vld [vmem:[#allocation2] sm:$0xff]  ;;  %v3052_v12 = vld [vmem:[#allocation8 + $0x20] sm:$0xff]   ;;  %v3053_v13 = vld [vmem:[#allocation8 + $0x8] sm:$0xff]   ;;  %s2552_s14 = sshll.u32 %s3638_s23, 7  ;;  %s2242_s26 = sshll.u32 %s4100_s27, 4  ;;  %s2243_s26 = int_to_ptr.vmem [resolvable:$true] %s2242_s26 }
 0x134   : > { %2655 = vmatprep.subr.bf16.mxu0 %v3551_v0  ;;  %2667 = vmatprep.subr.bf16.mxu1 %v3551_v0  ;;  %v3050_v9 = vld [vmem:[#allocation7 + $0x38] sm:$0xff]   ;;  %v613_v10 = vpack.c.bf16 %v548_v8, %v548_v8  ;;  %v3054_v14 = vld [vmem:[#allocation8 + $0x28] sm:$0xff]   ;;  %v3055_v15 = vld [vmem:[#allocation8 + $0x10] sm:$0xff]   ;;  %s4288_s29 = sld [smem:[#allocation35_spill]]  ;;  %s2213_s28 = scalar_lea.sflag [#allocation21], %s3950_s24 }
 0x135   : > { %v3056_v16 = vld [vmem:[#allocation8 + $0x30] sm:$0xff]   ;;  %v3057_v17 = vld [vmem:[#allocation8 + $0x18] sm:$0xff]   ;;  %v3059_v22 = vld [vmem:[#allocation10] sm:$0xff]   ;;  %s3413_s22 = scalar_lea.vmem %s2243_s26, 128  ;;  %p4289_p8 = scmp.ne.s32.totalorder %s4271_s12, 0 }
 0x136   : > { %v546_v18 = vld [vmem:[%s3955_s10] sm:$0xff]  ;;  %v547_v19 = vld [vmem:[%s3955_s10 + $0x8] sm:$0xff]  ;;  %p3414_p2 = scmp.ne.s32.totalorder %s2243_s26, %s3413_s22  ;;  %s3553_s2 = smov [#allocation20]  }
 0x137   : > { %2656 = vmatpush3.bf16.msra.mxu0 %v3045_v3  ;;  %2668 = vmatpush3.bf16.msra.mxu1 %v3046_v4  ;;  %v3058_v20 = vld [vmem:[#allocation8 + $0x38] sm:$0xff]   ;;  %v4009_v21 = vpack.c.bf16 %v547_v19, %v546_v18  ;;  %v3060_v23 = vld [vmem:[#allocation10 + $0x20] sm:$0xff]   ;;  %v3061_v24 = vld [vmem:[#allocation10 + $0x8] sm:$0xff]   ;;  %s3417_s10 = sshll.u32 %s3553_s2, 4  ;;  %s3418_s10 = int_to_ptr.vmem [resolvable:$false] %s3417_s10 }
 0x138   : > { %2657 = vmatprep.subr.bf16.mxu0 %v3551_v0  ;;  %2669 = vmatprep.subr.bf16.mxu1 %v3551_v0  ;;  %v3062_v25 = vld [vmem:[#allocation10 + $0x28] sm:$0xff]   ;;  %v3063_v26 = vld [vmem:[#allocation10 + $0x10] sm:$0xff]   ;;  %v3065_v28 = vld [vmem:[#allocation10 + $0x18] sm:$0xff]   ;;  %p3415_p3 = pnand %p3414_p2, %p4289_p8  ;;  %s3419_s30 = scalar_lea.vmem %s3418_s10, 256 }
 0x139   : > { %v3064_v27 = vld [vmem:[#allocation10 + $0x30] sm:$0xff]   ;;  %v3066_v29 = vld [vmem:[#allocation10 + $0x38] sm:$0xff]   ;;  %p3420_p6 = scmp.lt.s32.totalorder %s2243_s26, %s3418_s10  ;;  %p3421_p10 = scmp.lt.s32.totalorder %s3419_s30, %s3413_s22 }
 0x13a   : > { %s4163_s25 = scalar_lea.hbm %s4288_s29, %s2552_s14  ;;  %p3416_p5 = pneg %p3415_p3 }
 0x13b   : > { %2658 = vmatpush3.bf16.msra.mxu0 %v3047_v5  ;;  %2670 = vmatpush3.bf16.msra.mxu1 %v3048_v6  ;;  %p3422_p11 = por %p3421_p10, %p3420_p6 }
 0x13c   : > { %2659 = vmatprep.subr.bf16.mxu0 %v3551_v0  ;;  %2671 = vmatprep.subr.bf16.mxu1 %v3551_v0 }
 0x13d   : > { %p3423_p9 = pnand %p3422_p11, %p3416_p5 }
 0x13f   : > { %2660 = vmatpush3.bf16.msra.mxu0 %v3049_v7  ;;  %2672 = vmatpush3.bf16.msra.mxu1 %v3050_v9 }
 0x140   : > { %2677 = vmatprep.subr.bf16.mxu0 %v3551_v0  ;;  %2689 = vmatprep.subr.bf16.mxu1 %v3551_v0 }
 0x142   : > { %2662 = vmatmul.mubr.msk.bf16.vlgmr.msra.gmra.mrb[0].mxu0 %vm639_vm1, %v613_v10  ;;  %2674 = vmatmul.mubr.msk.bf16.vlgmr.msra.gmra.mrb[0].mxu1 %vm639_vm1, %v613_v10 }
 0x143   : > { %2678 = vmatpush3.bf16.msra.mxu0 %v3051_v11  ;;  %2690 = vmatpush3.bf16.msra.mxu1 %v3052_v12 }
 0x144   : > { %2679 = vmatprep.subr.bf16.mxu0 %v3551_v0  ;;  %2691 = vmatprep.subr.bf16.mxu1 %v3551_v0 }
 0x145   : > { %2685 = vmatprep.mubr.msk.bf16.mxu0 %vm3552_vm0, %v3551_v0  ;;  %2697 = vmatprep.mubr.msk.bf16.mxu1 %vm3552_vm0, %v3551_v0 }
 0x147   : > { %2680 = vmatpush3.bf16.msra.mxu0 %v3053_v13  ;;  %2692 = vmatpush3.bf16.msra.mxu1 %v3054_v14 }
 0x148   : > { %2681 = vmatprep.subr.bf16.mxu0 %v3551_v0  ;;  %2693 = vmatprep.subr.bf16.mxu1 %v3551_v0 }
 0x14b   : > { %2682 = vmatpush3.bf16.msra.mxu0 %v3055_v15  ;;  %2694 = vmatpush3.bf16.msra.mxu1 %v3056_v16 }
 0x14c   : > { %2683 = vmatprep.subr.bf16.mxu0 %v3551_v0  ;;  %2695 = vmatprep.subr.bf16.mxu1 %v3551_v0 }
 0x14f   : > { %2684 = vmatpush3.bf16.msra.mxu0 %v3057_v17  ;;  %2696 = vmatpush3.bf16.msra.mxu1 %v3058_v20 }
 0x150   : > { %2701 = vmatprep.subr.bf16.mxu0 %v3551_v0  ;;  %2713 = vmatprep.subr.bf16.mxu1 %v3551_v0 }
 0x152   : > { %2686 = vmatmul.mubr.msk.bf16.vlgmr.msra.gmra.mrb[4].mxu0 %vm639_vm1, %v4009_v21  ;;  %2698 = vmatmul.mubr.msk.bf16.vlgmr.msra.gmra.mrb[4].mxu1 %vm639_vm1, %v4009_v21 }
 0x153   : > { %2709 = vmatprep.mubr.msk.bf16.mxu0 %vm3552_vm0, %v3551_v0  ;;  %2721 = vmatprep.mubr.msk.bf16.mxu1 %vm3552_vm0, %v3551_v0 }
 0x154   : > { %2702 = vmatpush3.bf16.msra.mxu0 %v3059_v22  ;;  %2714 = vmatpush3.bf16.msra.mxu1 %v3060_v23 }
 0x155   : > { %2703 = vmatprep.subr.bf16.mxu0 %v3551_v0  ;;  %2715 = vmatprep.subr.bf16.mxu1 %v3551_v0 }
 0x158   : > { %2704 = vmatpush3.bf16.msra.mxu0 %v3061_v24  ;;  %2716 = vmatpush3.bf16.msra.mxu1 %v3062_v25 }
 0x159   : > { %2705 = vmatprep.subr.bf16.mxu0 %v3551_v0  ;;  %2717 = vmatprep.subr.bf16.mxu1 %v3551_v0 }
 0x15c   : > { %2706 = vmatpush3.bf16.msra.mxu0 %v3063_v26  ;;  %2718 = vmatpush3.bf16.msra.mxu1 %v3064_v27  ;;  %v3067_v26 = vld [vmem:[#allocation11] sm:$0xff]  }
 0x15d   : > { %2707 = vmatprep.subr.bf16.mxu0 %v3551_v0  ;;  %2719 = vmatprep.subr.bf16.mxu1 %v3551_v0 }
 0x160   : > { %2708 = vmatpush3.bf16.msra.mxu0 %v3065_v28  ;;  %2720 = vmatpush3.bf16.msra.mxu1 %v3066_v29 }
 0x161   : > { %2725 = vmatprep.subr.bf16.mxu0 %v3551_v0  ;;  %2731 = vmatprep.subr.bf16.mxu1 %v3551_v0 }
 0x163   : > { %2710 = vmatmul.mubr.msk.bf16.vlgmr.msra.gmra.mrb[8].mxu0 %vm639_vm1, %v4009_v21  ;;  %2722 = vmatmul.mubr.msk.bf16.vlgmr.msra.gmra.mrb[8].mxu1 %vm639_vm1, %v4009_v21 }
 0x164   : > { %2727 = vmatprep.mubr.msk.bf16.mxu0 %vm3552_vm0, %v3551_v0  ;;  %2733 = vmatprep.mubr.msk.bf16.mxu1 %vm3552_vm0, %v3551_v0 }
 0x215   : > { %v677_v30 = vpop.f32.mrb[0].mxu0  ;;  %v741_v32 = vpop.f32.mrb[0].mxu1 }
 0x216   : > { %v2663_v31 = vpop.f32.mrb[1].mxu0  ;;  %v2675_v34 = vpop.f32.mrb[1].mxu1  ;;  %v1010_v50 = vpack.c.bf16 %v677_v30, %v677_v30  ;;  %v1011_v51 = vpack.c.bf16 %v741_v32, %v741_v32  ;;  %v3068_v30 = vld [vmem:[#allocation11 + $0x8] sm:$0xff]  }
 0x217   : > { %v680_v33 = vpop.f32.mrb[2].mxu0  ;;  %v744_v36 = vpop.f32.mrb[2].mxu1  ;;  %v3069_v31 = vld [vmem:[#allocation11 + $0x20] sm:$0xff]   ;;  %v3071_v34 = vld [vmem:[#allocation11 + $0x28] sm:$0xff]  }
 0x218   : > { %v2664_v35 = vpop.f32.mrb[3].mxu0  ;;  %v2676_v37 = vpop.f32.mrb[3].mxu1  ;;  %v3070_v33 = vld [vmem:[#allocation11 + $0x10] sm:$0xff]  }
 0x219   : > { %v3072_v35 = vld [vmem:[#allocation11 + $0x18] sm:$0xff]   ;;  %v3073_v36 = vld [vmem:[#allocation11 + $0x30] sm:$0xff]  }
 0x21a   : > { %v3074_v37 = vld [vmem:[#allocation11 + $0x38] sm:$0xff]  }
 0x225   : > { %v808_v38 = vpop.f32.mrb[4].mxu0  ;;  %v873_v39 = vpop.f32.mrb[4].mxu1 }
 0x226   : > { %v2687_v40 = vpop.f32.mrb[5].mxu0  ;;  %v2699_v41 = vpop.f32.mrb[5].mxu1 }
 0x227   : > { %v811_v42 = vpop.f32.mrb[6].mxu0  ;;  %v876_v44 = vpop.f32.mrb[6].mxu1 }
 0x228   : > { %v1012_v43 = vpack.c.bf16 %v811_v42, %v808_v38  ;;  %v2688_v45 = vpop.f32.mrb[7].mxu0  ;;  %v1013_v46 = vpack.c.bf16 %v876_v44, %v873_v39  ;;  %v2700_v47 = vpop.f32.mrb[7].mxu1  ;;  %v3075_v39 = vld [vmem:[#allocation13] sm:$0xff]  }
 0x229   : > { %v3076_v45 = vld [vmem:[#allocation13 + $0x20] sm:$0xff]  }
 0x22a   : > { %v1018_v48 = vsel %vm639_vm1, %v1012_v43, 0  ;;  %v1064_v49 = vsel %vm639_vm1, %v1013_v46, 0  ;;  %v3077_v46 = vld [vmem:[#allocation13 + $0x8] sm:$0xff]  }
 0x22b   : > { %2726 = vmatpush3.bf16.xpose.msra.mxu0 %v1018_v48  ;;  %2732 = vmatpush3.bf16.xpose.msra.mxu1 %v1064_v49 }
 0x22c   : > { %2737 = vmatprep.subr.bf16.mxu0 %v3551_v0  ;;  %2743 = vmatprep.subr.bf16.mxu1 %v3551_v0 }
 0x232   : > { %2728 = vmatmul.mubr.msk.bf16.vlgmr.msra.gmra.mrb[12].mxu0 %vm639_vm1, %v1010_v50  ;;  %2734 = vmatmul.mubr.msk.bf16.vlgmr.msra.gmra.mrb[12].mxu1 %vm639_vm1, %v1011_v51  ;;  %v3078_v51 = vld [vmem:[#allocation13 + $0x28] sm:$0xff]  }
 0x233   : > { %2739 = vmatprep.mubr.msk.bf16.mxu0 %vm3552_vm0, %v3551_v0  ;;  %2745 = vmatprep.mubr.msk.bf16.mxu1 %vm3552_vm0, %v3551_v0 }
 0x236   : > { %v938_v52 = vpop.f32.mrb[8].mxu0  ;;  %v1003_v53 = vpop.f32.mrb[8].mxu1 }
 0x237   : > { %v2711_v54 = vpop.f32.mrb[9].mxu0  ;;  %v2723_v55 = vpop.f32.mrb[9].mxu1 }
 0x238   : > { %v941_v56 = vpop.f32.mrb[10].mxu0  ;;  %v1006_v57 = vpop.f32.mrb[10].mxu1  ;;  %v3081_v54 = vld [vmem:[#allocation13 + $0x18] sm:$0xff]  }
 0x239   : > { %v1133_v58 = vpack.c.bf16 %v941_v56, %v938_v52  ;;  %v2712_v59 = vpop.f32.mrb[11].mxu0  ;;  %v1134_v60 = vpack.c.bf16 %v1006_v57, %v1003_v53  ;;  %v2724_v61 = vpop.f32.mrb[11].mxu1  ;;  %v3079_v52 = vld [vmem:[#allocation13 + $0x10] sm:$0xff]   ;;  %v3082_v55 = vld [vmem:[#allocation13 + $0x38] sm:$0xff]   ;;  %v3083_v56 = vld [vmem:[#allocation14] sm:$0xff]  }
 0x23a   : > { %v3080_v53 = vld [vmem:[#allocation13 + $0x30] sm:$0xff]   ;;  %v3084_v57 = vld [vmem:[#allocation14 + $0x20] sm:$0xff]   ;;  %v3086_v59 = vld [vmem:[#allocation14 + $0x28] sm:$0xff]  }
 0x23b   : > { %2738 = vmatpush3.bf16.msra.mxu0 %v1133_v58  ;;  %2744 = vmatpush3.bf16.msra.mxu1 %v1134_v60  ;;  %v3085_v58 = vld [vmem:[#allocation14 + $0x8] sm:$0xff]   ;;  %v3087_v60 = vld [vmem:[#allocation14 + $0x10] sm:$0xff]  }
 0x23c   : > { %2749 = vmatprep.subr.bf16.mxu0 %v3551_v0  ;;  %2761 = vmatprep.subr.bf16.mxu1 %v3551_v0  ;;  %v3088_v61 = vld [vmem:[#allocation14 + $0x30] sm:$0xff]  }
 0x305   : > { %v1054_v62 = vpop.f32.mrb[12].mxu0  ;;  %v1100_v1 = vpop.f32.mrb[12].mxu1 }
 0x306   : > { %v1106_v63 = vmul.f32 0.125, %v1054_v62  ;;  %v2729_v2 = vpop.f32.mrb[13].mxu0  ;;  %v2735_v3 = vpop.f32.mrb[13].mxu1  ;;  %v1107_v5 = vmul.f32 0.125, %v1100_v1  ;;  %v3090_v62 = vld [vmem:[#allocation14 + $0x38] sm:$0xff]  }
 0x307   : > { %v1057_v4 = vpop.f32.mrb[14].mxu0  ;;  %v1103_v6 = vpop.f32.mrb[14].mxu1 }
 0x308   : > { %v2730_v7 = vpop.f32.mrb[15].mxu0  ;;  %v1109_v8 = vsel %vm1108_vm2, %v1106_v63, -inf  ;;  %v2736_v9 = vpop.f32.mrb[15].mxu1  ;;  %v1112_v10 = vsel %vm1108_vm2, %v1107_v5, -inf }
 0x309   : > { %1110 = vmax.xlane.f32.xlu0 %v1109_v8 }
 0x30d   : > { %1113 = vmax.xlane.f32.xlu0 %v1112_v10 }
 0x396   : > { %v1111_v11 = vpop.xlane.xlu0 %1110 }
 0x397   : > { %v1115_v12 = vsub.f32 %v1106_v63, %v1111_v11  ;;  %v3091_v11 = vld [vmem:[#allocation16] sm:$0xff]  }
 0x399   : > { %v1117_v13 = vmul.f32 1.442695, %v1115_v12  ;;  %v3092_v12 = vld [vmem:[#allocation16 + $0x20] sm:$0xff]  }
 0x39a   : > { %v1114_v14 = vpop.xlane.xlu0 %1113 }
 0x39b   : > { %3107 = vpow2.f32 %v1117_v13  ;;  %v1116_v15 = vsub.f32 %v1107_v5, %v1114_v14  ;;  %v3093_v14 = vld [vmem:[#allocation16 + $0x8] sm:$0xff]  }
 0x39d   : > { %v1119_v16 = vmul.f32 1.442695, %v1116_v15  ;;  %v3094_v15 = vld [vmem:[#allocation16 + $0x28] sm:$0xff]  }
 0x39f   : > { %3109 = vpow2.f32 %v1119_v16  ;;  %v3095_v16 = vld [vmem:[#allocation16 + $0x10] sm:$0xff]  }
 0x3a5   : > { %v3108_v17 = vpop.eup %3107 }
 0x3a6   : > { %v1121_v18 = vsel %vm1108_vm2, %v3108_v17, 0.0 }
 0x3a7   : > { %1122 = vadd.xlane.f32.xlu1 %v1121_v18 }
 0x3a9   : > { %v3110_v19 = vpop.eup %3109 }
 0x3aa   : > { %v1124_v20 = vsel %vm1108_vm2, %v3110_v19, 0.0 }
 0x3ab   : > { %1125 = vadd.xlane.f32.xlu1 %v1124_v20 }
 0x434   : > { %v1123_v22 = vpop.xlane.xlu1 %1122 }
 0x435   : > { %3111 = vrcp.f32 %v1123_v22  ;;  %v3097_v22 = vld [vmem:[#allocation16 + $0x18] sm:$0xff]  }
 0x438   : > { %v1126_v23 = vpop.xlane.xlu1 %1125 }
 0x439   : > { %3113 = vrcp.f32 %v1126_v23  ;;  %v3098_v23 = vld [vmem:[#allocation16 + $0x38] sm:$0xff]  }
 0x43f   : > { %v3112_v24 = vpop.eup %3111 }
 0x440   : > { %v1129_v25 = vmul.f32 %v3112_v24, %v3108_v17  ;;  %v3096_v17 = vld [vmem:[#allocation16 + $0x30] sm:$0xff]  }
 0x442   : > { %v1131_v27 = vpack.c.bf16 %v1129_v25, %v1129_v25 }
 0x443   : > { %v3114_v28 = vpop.eup %3113 }
 0x444   : > { %v1130_v29 = vmul.f32 %v3114_v28, %v3110_v19  ;;  %2740 = vmatmul.mubr.msk.bf16.vlgmr.msra.gmra.mrb[16].mxu0 %vm1108_vm2, %v1131_v27 }
 0x445   : > { %2750 = vmatpush3.bf16.msra.mxu0 %v3067_v26  ;;  %2757 = vmatprep.mubr.msk.bf16.mxu0 %vm3552_vm0, %v3551_v0 }
 0x446   : > { %v1132_v32 = vpack.c.bf16 %v1130_v29, %v1130_v29  ;;  %2751 = vmatprep.subr.bf16.mxu0 %v3551_v0 }
 0x448   : > { %2746 = vmatmul.mubr.msk.bf16.vlgmr.msra.gmra.mrb[16].mxu1 %vm1108_vm2, %v1132_v32 }
 0x449   : > { %2752 = vmatpush3.bf16.msra.mxu0 %v3068_v30  ;;  %2762 = vmatpush3.bf16.msra.mxu1 %v3069_v31 }
 0x44a   : > { %2753 = vmatprep.subr.bf16.mxu0 %v3551_v0  ;;  %2763 = vmatprep.subr.bf16.mxu1 %v3551_v0 }
 0x44b   : > { %2769 = vmatprep.mubr.msk.bf16.mxu1 %vm3552_vm0, %v3551_v0 }
 0x44d   : > { %2754 = vmatpush3.bf16.msra.mxu0 %v3070_v33  ;;  %2764 = vmatpush3.bf16.msra.mxu1 %v3071_v34 }
 0x44e   : > { %2755 = vmatprep.subr.bf16.mxu0 %v3551_v0  ;;  %2765 = vmatprep.subr.bf16.mxu1 %v3551_v0 }
 0x451   : > { %2756 = vmatpush3.bf16.msra.mxu0 %v3072_v35  ;;  %2766 = vmatpush3.bf16.msra.mxu1 %v3073_v36 }
 0x452   : > { %2767 = vmatprep.subr.bf16.mxu1 %v3551_v0  ;;  %2773 = vmatprep.subr.bf16.mxu0 %v3551_v0 }
 0x455   : > { %2768 = vmatpush3.bf16.msra.mxu1 %v3074_v37 }
 0x456   : > { %2785 = vmatprep.subr.bf16.mxu1 %v3551_v0 }
 0x517   : > { %v1172_v38 = vpop.f32.mrb[16].mxu0 }
 0x518   : > { %v1221_v40 = vpack.c.bf16 %v1172_v38, %v1172_v38  ;;  %v2741_v41 = vpop.f32.mrb[17].mxu0 }
 0x519   : > { %v1175_v42 = vpop.f32.mrb[18].mxu0 }
 0x51a   : > { %v2742_v43 = vpop.f32.mrb[19].mxu0  ;;  %2758 = vmatmul.mubr.msk.bf16.vlgmr.msra.gmra.mrb[20].mxu0 %vm639_vm1, %v1221_v40 }
 0x51b   : > { %v1215_v44 = vpop.f32.mrb[16].mxu1  ;;  %2774 = vmatpush3.bf16.msra.mxu0 %v3075_v39  ;;  %2781 = vmatprep.mubr.msk.bf16.mxu0 %vm3552_vm0, %v3551_v0 }
 0x51c   : > { %v1222_v47 = vpack.c.bf16 %v1215_v44, %v1215_v44  ;;  %v2747_v48 = vpop.f32.mrb[17].mxu1  ;;  %2775 = vmatprep.subr.bf16.mxu0 %v3551_v0 }
 0x51d   : > { %v1218_v49 = vpop.f32.mrb[18].mxu1 }
 0x51e   : > { %v2748_v50 = vpop.f32.mrb[19].mxu1  ;;  %2770 = vmatmul.mubr.msk.bf16.vlgmr.msra.gmra.mrb[20].mxu1 %vm639_vm1, %v1222_v47 }
 0x51f   : > { %2786 = vmatpush3.bf16.msra.mxu1 %v3076_v45  ;;  %2776 = vmatpush3.bf16.msra.mxu0 %v3077_v46 }
 0x520   : > { %2787 = vmatprep.subr.bf16.mxu1 %v3551_v0  ;;  %2777 = vmatprep.subr.bf16.mxu0 %v3551_v0 }
 0x521   : > { %2793 = vmatprep.mubr.msk.bf16.mxu1 %vm3552_vm0, %v3551_v0 }
 0x523   : > { %2788 = vmatpush3.bf16.msra.mxu1 %v3078_v51  ;;  %2778 = vmatpush3.bf16.msra.mxu0 %v3079_v52 }
 0x524   : > { %2789 = vmatprep.subr.bf16.mxu1 %v3551_v0  ;;  %2779 = vmatprep.subr.bf16.mxu0 %v3551_v0 }
 0x527   : > { %2790 = vmatpush3.bf16.msra.mxu1 %v3080_v53  ;;  %2780 = vmatpush3.bf16.msra.mxu0 %v3081_v54 }
 0x528   : > { %2791 = vmatprep.subr.bf16.mxu1 %v3551_v0  ;;  %2797 = vmatprep.subr.bf16.mxu0 %v3551_v0 }
 0x52a   : > { %2782 = vmatmul.mubr.msk.bf16.vlgmr.msra.gmra.mrb[24].mxu0 %vm639_vm1, %v4009_v21 }
 0x52b   : > { %2792 = vmatpush3.bf16.msra.mxu1 %v3082_v55  ;;  %2798 = vmatpush3.bf16.msra.mxu0 %v3083_v56 }
 0x52c   : > { %2809 = vmatprep.subr.bf16.mxu1 %v3551_v0  ;;  %2799 = vmatprep.subr.bf16.mxu0 %v3551_v0 }
 0x52d   : > { %2805 = vmatprep.mubr.msk.bf16.mxu0 %vm3552_vm0, %v3551_v0 }
 0x52e   : > { %2794 = vmatmul.mubr.msk.bf16.vlgmr.msra.gmra.mrb[24].mxu1 %vm639_vm1, %v4009_v21  ;;  %v3089_v21 = vld [vmem:[#allocation14 + $0x18] sm:$0xff]  }
 0x52f   : > { %2810 = vmatpush3.bf16.msra.mxu1 %v3084_v57  ;;  %2800 = vmatpush3.bf16.msra.mxu0 %v3085_v58 }
 0x530   : > { %2811 = vmatprep.subr.bf16.mxu1 %v3551_v0  ;;  %2801 = vmatprep.subr.bf16.mxu0 %v3551_v0 }
 0x531   : > { %2817 = vmatprep.mubr.msk.bf16.mxu1 %vm3552_vm0, %v3551_v0 }
 0x533   : > { %2812 = vmatpush3.bf16.msra.mxu1 %v3086_v59  ;;  %2802 = vmatpush3.bf16.msra.mxu0 %v3087_v60 }
 0x534   : > { %2813 = vmatprep.subr.bf16.mxu1 %v3551_v0  ;;  %2803 = vmatprep.subr.bf16.mxu0 %v3551_v0 }
 0x537   : > { %2814 = vmatpush3.bf16.msra.mxu1 %v3088_v61  ;;  %2804 = vmatpush3.bf16.msra.mxu0 %v3089_v21 }
 0x538   : > { %2815 = vmatprep.subr.bf16.mxu1 %v3551_v0  ;;  %2821 = vmatprep.subr.bf16.mxu0 %v3551_v0 }
 0x53b   : > { %2816 = vmatpush3.bf16.msra.mxu1 %v3090_v62 }
 0x53c   : > { %2833 = vmatprep.subr.bf16.mxu1 %v3551_v0 }
 0x5ed   : > { %v1284_v63 = vpop.f32.mrb[20].mxu0 }
 0x5ee   : > { %v2759_v1 = vpop.f32.mrb[21].mxu0  ;;  %v1357_v5 = vsel %vm639_vm1, %v1284_v63, 0.0 }
 0x5ef   : > { %v1287_v2 = vpop.f32.mrb[22].mxu0 }
 0x5f0   : > { %v2760_v3 = vpop.f32.mrb[23].mxu0 }
 0x5f1   : > { %v1351_v4 = vpop.f32.mrb[20].mxu1 }
 0x5f2   : > { %v1358_v6 = vsel %vm639_vm1, %v1351_v4, 0.0  ;;  %v2771_v7 = vpop.f32.mrb[21].mxu1 }
 0x5f3   : > { %v1359_v8 = vadd.f32 %v1358_v6, %v1357_v5  ;;  %v1354_v9 = vpop.f32.mrb[22].mxu1 }
 0x5f4   : > { %v2772_v10 = vpop.f32.mrb[23].mxu1 }
 0x5f5   : > { %v1425_v13 = vpack.c.bf16 %v1359_v8, %v1359_v8  ;;  %1360 = vst.msk [vmem:[%s4100_s27] sm:$0xff] %vm639_vm1, %v1359_v8 }
 0x5f7   : > { %2806 = vmatmul.mubr.msk.bf16.vlgmr.msra.gmra.mrb[28].mxu0 %vm639_vm1, %v1425_v13  ;;  %2818 = vmatmul.mubr.msk.bf16.vlgmr.msra.gmra.mrb[28].mxu1 %vm639_vm1, %v1425_v13 }
 0x5f8   : > { %2822 = vmatpush3.bf16.msra.mxu0 %v3091_v11  ;;  %2834 = vmatpush3.bf16.msra.mxu1 %v3092_v12 }
 0x5f9   : > { %2823 = vmatprep.subr.bf16.mxu0 %v3551_v0  ;;  %2835 = vmatprep.subr.bf16.mxu1 %v3551_v0 }
 0x5fa   : > { %2829 = vmatprep.mubr.msk.bf16.mxu0 %vm3552_vm0, %v3551_v0  ;;  %2841 = vmatprep.mubr.msk.bf16.mxu1 %vm3552_vm0, %v3551_v0 }
 0x5fc   : > { %2824 = vmatpush3.bf16.msra.mxu0 %v3093_v14  ;;  %2836 = vmatpush3.bf16.msra.mxu1 %v3094_v15 }
 0x5fd   : > { %2825 = vmatprep.subr.bf16.mxu0 %v3551_v0  ;;  %2837 = vmatprep.subr.bf16.mxu1 %v3551_v0  ;;  %v1484_v18 = vpop.f32.mrb[24].mxu0 }
 0x5fe   : > { %v2783_v19 = vpop.f32.mrb[25].mxu0 }
 0x5ff   : > { %v1487_v20 = vpop.f32.mrb[26].mxu0 }
 0x600   : > { %2826 = vmatpush3.bf16.msra.mxu0 %v3095_v16  ;;  %2838 = vmatpush3.bf16.msra.mxu1 %v3096_v17  ;;  %v1815_v24 = vpack.c.bf16 %v1487_v20, %v1484_v18  ;;  %v2784_v25 = vpop.f32.mrb[27].mxu0 }
 0x601   : > { %2827 = vmatprep.subr.bf16.mxu0 %v3551_v0  ;;  %2839 = vmatprep.subr.bf16.mxu1 %v3551_v0  ;;  %v1549_v26 = vpop.f32.mrb[24].mxu1 }
 0x602   : > { %v2795_v27 = vpop.f32.mrb[25].mxu1 }
 0x603   : > { %v1552_v28 = vpop.f32.mrb[26].mxu1 }
 0x604   : > { %2828 = vmatpush3.bf16.msra.mxu0 %v3097_v22  ;;  %2840 = vmatpush3.bf16.msra.mxu1 %v3098_v23  ;;  %v1816_v29 = vpack.c.bf16 %v1552_v28, %v1549_v26  ;;  %v2796_v30 = vpop.f32.mrb[27].mxu1 }
 0x605   : > { %2845 = vmatprep.subr.bf16.mxu0 %v3551_v0  ;;  %2851 = vmatprep.subr.bf16.mxu1 %v3551_v0 }
 0x607   : > { %2830 = vmatmul.mubr.msk.bf16.vlgmr.msra.gmra.mrb[32].mxu0 %vm639_vm1, %v1425_v13  ;;  %2842 = vmatmul.mubr.msk.bf16.vlgmr.msra.gmra.mrb[32].mxu1 %vm639_vm1, %v1425_v13 }
 0x608   : > { %2847 = vmatprep.mubr.msk.bf16.mxu0 %vm3552_vm0, %v3551_v0  ;;  %2853 = vmatprep.mubr.msk.bf16.mxu1 %vm3552_vm0, %v3551_v0 }
 0x6ca   : > { %v1617_v31 = vpop.f32.mrb[28].mxu0  ;;  %v1681_v32 = vpop.f32.mrb[28].mxu1 }
 0x6cb   : > { %v1817_v33 = vpack.c.bf16 %v1617_v31, %v1617_v31  ;;  %v1818_v34 = vpack.c.bf16 %v1681_v32, %v1681_v32  ;;  %v2807_v35 = vpop.f32.mrb[29].mxu0  ;;  %v2819_v36 = vpop.f32.mrb[29].mxu1 }
 0x6cc   : > { %v1620_v37 = vpop.f32.mrb[30].mxu0  ;;  %v1684_v38 = vpop.f32.mrb[30].mxu1 }
 0x6cd   : > { %v1823_v39 = vsel %vm639_vm1, %v1817_v33, 0  ;;  %v1870_v40 = vsel %vm639_vm1, %v1818_v34, 0  ;;  %v2808_v41 = vpop.f32.mrb[31].mxu0  ;;  %v2820_v42 = vpop.f32.mrb[31].mxu1  ;;  %v3099_v37 = vld [vmem:[#allocation17] sm:$0xff]  }
 0x6ce   : > { %2846 = vmatpush3.bf16.xpose.msra.mxu0 %v1823_v39  ;;  %2852 = vmatpush3.bf16.xpose.msra.mxu1 %v1870_v40  ;;  %v3100_v42 = vld [vmem:[#allocation17 + $0x8] sm:$0xff]  }
 0x6cf   : > { %2857 = vmatprep.subr.bf16.mxu0 %v3551_v0  ;;  %2863 = vmatprep.subr.bf16.mxu1 %v3551_v0 }
 0x6d5   : > { %2848 = vmatmul.mubr.msk.bf16.vlgmr.msra.gmra.mrb[36].mxu0 %vm639_vm1, %v1815_v24  ;;  %2854 = vmatmul.mubr.msk.bf16.vlgmr.msra.gmra.mrb[36].mxu1 %vm639_vm1, %v1816_v29 }
 0x6d6   : > { %2859 = vmatprep.mubr.msk.bf16.mxu0 %vm3552_vm0, %v3551_v0  ;;  %2865 = vmatprep.mubr.msk.bf16.mxu1 %vm3552_vm0, %v3551_v0 }
 0x6da   : > { %v1745_v43 = vpop.f32.mrb[32].mxu0  ;;  %v1809_v44 = vpop.f32.mrb[32].mxu1 }
 0x6db   : > { %v1964_v45 = vpack.c.bf16 %v1745_v43, %v1745_v43  ;;  %v1965_v46 = vpack.c.bf16 %v1809_v44, %v1809_v44  ;;  %v2831_v47 = vpop.f32.mrb[33].mxu0  ;;  %v2843_v48 = vpop.f32.mrb[33].mxu1  ;;  %v3101_v43 = vld [vmem:[#allocation17 + $0x20] sm:$0xff]  }
 0x6dc   : > { %v1748_v49 = vpop.f32.mrb[34].mxu0  ;;  %v1812_v50 = vpop.f32.mrb[34].mxu1  ;;  %v3104_v47 = vld [vmem:[#allocation17 + $0x18] sm:$0xff]   ;;  %v3105_v48 = vld [vmem:[#allocation17 + $0x30] sm:$0xff]  }
 0x6dd   : > { %v1971_v51 = vsel %vm1969_vm3, %v1964_v45, 0  ;;  %v2018_v52 = vsel %vm1969_vm3, %v1965_v46, 0  ;;  %v2832_v53 = vpop.f32.mrb[35].mxu0  ;;  %v2844_v54 = vpop.f32.mrb[35].mxu1  ;;  %v3102_v45 = vld [vmem:[#allocation17 + $0x10] sm:$0xff]   ;;  %v3103_v46 = vld [vmem:[#allocation17 + $0x28] sm:$0xff]  }
 0x6de   : > { %2858 = vmatpush3.bf16.msra.mxu0 %v1971_v51  ;;  %2864 = vmatpush3.bf16.msra.mxu1 %v2018_v52  ;;  %v3106_v49 = vld [vmem:[#allocation17 + $0x38] sm:$0xff]  }
 0x6df   : > { %2869 = vmatprep.subr.bf16.mxu0 %v3551_v0  ;;  %2881 = vmatprep.subr.bf16.mxu1 %v3551_v0 }
 0x7a8   : > { %v1859_v55 = vpop.f32.mrb[36].mxu0  ;;  %v1906_v56 = vpop.f32.mrb[36].mxu1 }
 0x7a9   : > { %v1913_v57 = vmul.f32 0.125, %v1859_v55  ;;  %v2849_v58 = vpop.f32.mrb[37].mxu0  ;;  %v2855_v59 = vpop.f32.mrb[37].mxu1  ;;  %v1915_v21 = vmul.f32 0.125, %v1906_v56 }
 0x7aa   : > { %v1862_v60 = vpop.f32.mrb[38].mxu0  ;;  %v1909_v61 = vpop.f32.mrb[38].mxu1 }
 0x7ab   : > { %v1914_v62 = vmul.f32 0.125, %v1862_v60  ;;  %v2850_v63 = vpop.f32.mrb[39].mxu0  ;;  %v2856_v1 = vpop.f32.mrb[39].mxu1  ;;  %v1918_v2 = vsel %vm1917_vm4, %v1913_v57, -inf  ;;  %v1916_v3 = vmul.f32 0.125, %v1909_v61  ;;  %v1924_v5 = vsel %vm1917_vm4, %v1915_v21, -inf }
 0x7ac   : > { %1919 = vmax.xlane.f32.xlu0 %v1918_v2 }
 0x7ad   : > { %v1921_v4 = vsel %vm1917_vm4, %v1914_v62, -inf  ;;  %v1927_v6 = vsel %vm1917_vm4, %v1916_v3, -inf }
 0x7ae   : > { %1922 = vmax.xlane.f32.xlu1 %v1921_v4 }
 0x7b0   : > { %1925 = vmax.xlane.f32.xlu0 %v1924_v5 }
 0x7b2   : > { %1928 = vmax.xlane.f32.xlu1 %v1927_v6 }
 0x839   : > { %v1920_v7 = vpop.xlane.xlu0 %1919 }
 0x83a   : > { %v1930_v8 = vsub.f32 %v1913_v57, %v1920_v7 }
 0x83b   : > { %v1923_v9 = vpop.xlane.xlu1 %1922 }
 0x83c   : > { %v1934_v10 = vmul.f32 1.442695, %v1930_v8  ;;  %v1931_v11 = vsub.f32 %v1914_v62, %v1923_v9 }
 0x83d   : > { %v1926_v12 = vpop.xlane.xlu0 %1925 }
 0x83e   : > { %3115 = vpow2.f32 %v1934_v10  ;;  %v1936_v13 = vmul.f32 1.442695, %v1931_v11  ;;  %v1932_v14 = vsub.f32 %v1915_v21, %v1926_v12 }
 0x83f   : > { %v1929_v15 = vpop.xlane.xlu1 %1928 }
 0x840   : > { %3117 = vpow2.f32 %v1936_v13  ;;  %v1938_v16 = vmul.f32 1.442695, %v1932_v14  ;;  %v1933_v17 = vsub.f32 %v1916_v3, %v1929_v15 }
 0x842   : > { %3119 = vpow2.f32 %v1938_v16  ;;  %v1940_v18 = vmul.f32 1.442695, %v1933_v17 }
 0x844   : > { %3121 = vpow2.f32 %v1940_v18 }
 0x848   : > { %v3116_v19 = vpop.eup %3115 }
 0x849   : > { %v1942_v20 = vsel %vm1917_vm4, %v3116_v19, 0.0 }
 0x84a   : > { %v3118_v22 = vpop.eup %3117  ;;  %1943 = vadd.xlane.f32.xlu0 %v1942_v20 }
 0x84b   : > { %v1945_v23 = vsel %vm1917_vm4, %v3118_v22, 0.0 }
 0x84c   : > { %v3120_v24 = vpop.eup %3119  ;;  %1946 = vadd.xlane.f32.xlu1 %v1945_v23 }
 0x84d   : > { %v1948_v25 = vsel %vm1917_vm4, %v3120_v24, 0.0 }
 0x84e   : > { %v3122_v26 = vpop.eup %3121  ;;  %1949 = vadd.xlane.f32.xlu0 %v1948_v25 }
 0x84f   : > { %v1951_v27 = vsel %vm1917_vm4, %v3122_v26, 0.0 }
 0x850   : > { %1952 = vadd.xlane.f32.xlu1 %v1951_v27 }
 0x8d7   : > { %v1944_v28 = vpop.xlane.xlu0 %1943 }
 0x8d8   : > { %3123 = vrcp.f32 %v1944_v28 }
 0x8d9   : > { %v1947_v29 = vpop.xlane.xlu1 %1946 }
 0x8da   : > { %3125 = vrcp.f32 %v1947_v29 }
 0x8db   : > { %v1950_v30 = vpop.xlane.xlu0 %1949 }
 0x8dc   : > { %3127 = vrcp.f32 %v1950_v30 }
 0x8dd   : > { %v1953_v31 = vpop.xlane.xlu1 %1952 }
 0x8de   : > { %3129 = vrcp.f32 %v1953_v31 }
 0x8e2   : > { %v3124_v32 = vpop.eup %3123 }
 0x8e3   : > { %v1958_v34 = vmul.f32 %v3124_v32, %v3116_v19 }
 0x8e4   : > { %v3126_v33 = vpop.eup %3125 }
 0x8e5   : > { %v1959_v35 = vmul.f32 %v3126_v33, %v3118_v22 }
 0x8e6   : > { %v3128_v36 = vpop.eup %3127 }
 0x8e7   : > { %v1962_v38 = vpack.c.bf16 %v1959_v35, %v1958_v34  ;;  %v1960_v40 = vmul.f32 %v3128_v36, %v3120_v24 }
 0x8e8   : > { %v3130_v39 = vpop.eup %3129 }
 0x8e9   : > { %v1961_v41 = vmul.f32 %v3130_v39, %v3122_v26  ;;  %2860 = vmatmul.mubr.msk.bf16.vlgmr.msra.gmra.mrb[40].mxu0 %vm1917_vm4, %v1962_v38 }
 0x8ea   : > { %2870 = vmatpush3.bf16.msra.mxu0 %v3099_v37  ;;  %2877 = vmatprep.mubr.msk.bf16.mxu0 %vm3552_vm0, %v3551_v0 }
 0x8eb   : > { %v1963_v44 = vpack.c.bf16 %v1961_v41, %v1960_v40  ;;  %2871 = vmatprep.subr.bf16.mxu0 %v3551_v0 }
 0x8ed   : > { %2866 = vmatmul.mubr.msk.bf16.vlgmr.msra.gmra.mrb[40].mxu1 %vm1917_vm4, %v1963_v44 }
 0x8ee   : > { %2872 = vmatpush3.bf16.msra.mxu0 %v3100_v42  ;;  %2882 = vmatpush3.bf16.msra.mxu1 %v3101_v43 }
 0x8ef   : > { %2873 = vmatprep.subr.bf16.mxu0 %v3551_v0  ;;  %2883 = vmatprep.subr.bf16.mxu1 %v3551_v0 }
 0x8f0   : > { %2889 = vmatprep.mubr.msk.bf16.mxu1 %vm3552_vm0, %v3551_v0 }
 0x8f2   : > { %2874 = vmatpush3.bf16.msra.mxu0 %v3102_v45  ;;  %2884 = vmatpush3.bf16.msra.mxu1 %v3103_v46 }
 0x8f3   : > { %2875 = vmatprep.subr.bf16.mxu0 %v3551_v0  ;;  %2885 = vmatprep.subr.bf16.mxu1 %v3551_v0 }
 0x8f6   : > { %2876 = vmatpush3.bf16.msra.mxu0 %v3104_v47  ;;  %2886 = vmatpush3.bf16.msra.mxu1 %v3105_v48 }
 0x8f7   : > { %2887 = vmatprep.subr.bf16.mxu1 %v3551_v0 }
 0x8fa   : > { %2888 = vmatpush3.bf16.msra.mxu1 %v3106_v49 }
 0x9bc   : > { %v2007_v50 = vpop.f32.mrb[40].mxu0 }
 0x9bd   : > { %v2861_v51 = vpop.f32.mrb[41].mxu0 }
 0x9be   : > { %v2010_v52 = vpop.f32.mrb[42].mxu0 }
 0x9bf   : > { %v2061_v53 = vpack.c.bf16 %v2010_v52, %v2007_v50  ;;  %v2862_v54 = vpop.f32.mrb[43].mxu0 }
 0x9c0   : > { %v2054_v55 = vpop.f32.mrb[40].mxu1 }
 0x9c1   : > { %v2867_v56 = vpop.f32.mrb[41].mxu1  ;;  %2878 = vmatmul.mubr.msk.bf16.vlgmr.msra.gmra.mrb[44].mxu0 %vm639_vm1, %v2061_v53 }
 0x9c2   : > { %v2057_v57 = vpop.f32.mrb[42].mxu1 }
 0x9c3   : > { %v2062_v58 = vpack.c.bf16 %v2057_v57, %v2054_v55  ;;  %v2868_v59 = vpop.f32.mrb[43].mxu1 }
 0x9c5   : > { %2890 = vmatmul.mubr.msk.bf16.vlgmr.msra.gmra.mrb[44].mxu1 %vm639_vm1, %v2062_v58 }
 0x9c6   : > { %3426 = shalt.err (!%p3423_p9)
}
 0x9c7   : > { %s3427_s27 = scalar_lea.hbm %s4163_s25, 128  ;;  %s3431_s0 = scalar_lea.hbm %s4288_s29, 256 }
 0x9c8   : > { %p3428_p4 = scmp.ne.s32.totalorder %s4163_s25, %s3427_s27  ;;  %p3432_p1 = scmp.lt.u32.totalorder %s4163_s25, %s4288_s29 }
 0x9c9   : > { %p3433_p13 = scmp.lt.u32.totalorder %s3431_s0, %s3427_s27  ;;  %p3435_p2 = scmp.lt.u32.totalorder %s3427_s27, %s4163_s25 }
 0x9ca   : > { %p3429_p12 = pnand %p3428_p4, %p4289_p8 }
 0x9cb   : > { %p3434_p0 = por %p3433_p13, %p3432_p1 }
 0x9cc   : > { %p3430_p7 = pneg %p3429_p12 }
 0x9cd   : > { %p3436_p3 = por %p3435_p2, %p3434_p0 }
 0x9cf   : > { %p3437_p5 = pnand %p3436_p3, %p3430_p7 }
 0x9d1   : > { %3440 = shalt.err (!%p3437_p5)
}
 0x9d2   : > { %2932 = dma.vmem_to_hbm [thread:$0]  (%p4289_p8), %s2243_s26, 128, %s4163_s25, %s2213_s28  }
 0x9d3   : > { %s2556_s22 = sshll.u32 %s3638_s23, 8  ;;  %s537_s30 = scalar_lea.vmem [#allocation19], %s2449_s15 }
 0x9d4   : > { %s2226_s14 = sshll.u32 %s537_s30, 4  ;;  %s4290_s23 = sld [smem:[#allocation34_spill]]  ;;  %s4195_s14 = int_to_ptr.vmem [resolvable:$true] %s2226_s14 }
 0x9d5   : > { %s2208_s15 = scalar_lea.sflag [#allocation4], %s3950_s24  ;;  %s3441_s27 = scalar_lea.vmem %s4195_s14, 256 }
 0x9d6   : > { %p3442_p6 = scmp.ne.s32.totalorder %s4195_s14, %s3441_s27  ;;  %s3554_s13 = smov [#allocation19]  }
 0x9d7   : > { %s3445_s0 = sshll.u32 %s3554_s13, 4  ;;  %s3446_s0 = int_to_ptr.vmem [resolvable:$false] %s3445_s0 }
 0x9d8   : > { %p3443_p10 = pnand %p3442_p6, %p4289_p8  ;;  %s3447_s2 = scalar_lea.vmem %s3446_s0, 512 }
 0x9d9   : > { %p3448_p9 = scmp.lt.s32.totalorder %s4195_s14, %s3446_s0  ;;  %p3449_p4 = scmp.lt.s32.totalorder %s3447_s2, %s3441_s27 }
 0x9da   : > { %s4193_s28 = scalar_lea.hbm %s4290_s23, %s2556_s22  ;;  %p3444_p11 = pneg %p3443_p10 }
 0x9db   : > { %p3450_p12 = por %p3449_p4, %p3448_p9 }
 0x9dd   : > { %p3451_p7 = pnand %p3450_p12, %p3444_p11 }
 0xa94   : > { %v2124_v0 = vpop.f32.mrb[44].mxu0 }
 0xa95   : > { %v2879_v60 = vpop.f32.mrb[45].mxu0  ;;  %v2199_v63 = vsel %vm639_vm1, %v2124_v0, 0.0 }
 0xa96   : > { %v2127_v61 = vpop.f32.mrb[46].mxu0 }
 0xa97   : > { %v2880_v21 = vpop.f32.mrb[47].mxu0  ;;  %v2202_v5 = vsel %vm639_vm1, %v2127_v61, 0.0 }
 0xa98   : > { %v2192_v62 = vpop.f32.mrb[44].mxu1 }
 0xa99   : > { %v2200_v1 = vsel %vm639_vm1, %v2192_v62, 0.0  ;;  %v2891_v2 = vpop.f32.mrb[45].mxu1 }
 0xa9a   : > { %v2201_v3 = vadd.f32 %v2200_v1, %v2199_v63  ;;  %v2195_v4 = vpop.f32.mrb[46].mxu1 }
 0xa9b   : > { %v2203_v6 = vsel %vm639_vm1, %v2195_v4, 0.0  ;;  %v2892_v7 = vpop.f32.mrb[47].mxu1 }
 0xa9c   : > { %2205 = vst.msk [vmem:[%s537_s30] sm:$0xff] %vm639_vm1, %v2201_v3  ;;  %v2204_v8 = vadd.f32 %v2203_v6, %v2202_v5 }
 0xa9e   : > { %2206 = vst.msk [vmem:[%s537_s30 + $0x8] sm:$0xff] %vm639_vm1, %v2204_v8 }
 0xa9f   : > { %3454 = shalt.err (!%p3451_p7)
}
 0xaa0   : > { %s3455_s10 = scalar_lea.hbm %s4193_s28, 256  ;;  %s3459_s26 = scalar_lea.hbm %s4290_s23, 512 }
 0xaa1   : > { %p3456_p1 = scmp.ne.s32.totalorder %s4193_s28, %s3455_s10  ;;  %p3460_p2 = scmp.lt.u32.totalorder %s4193_s28, %s4290_s23 }
 0xaa2   : > { %p3461_p3 = scmp.lt.u32.totalorder %s3459_s26, %s3455_s10  ;;  %p3463_p6 = scmp.lt.u32.totalorder %s3455_s10, %s4193_s28 }
 0xaa3   : > { %p3457_p13 = pnand %p3456_p1, %p4289_p8 }
 0xaa4   : > { %p3462_p5 = por %p3461_p3, %p3460_p2 }
 0xaa5   : > { %p3458_p0 = pneg %p3457_p13 }
 0xaa6   : > { %p3464_p10 = por %p3463_p6, %p3462_p5 }
 0xaa8   : > { %p3465_p11 = pnand %p3464_p10, %p3458_p0 }
 0xaaa   : > { %3468 = shalt.err (!%p3465_p11)
}
 0xaab   : > { %s3555_s27 = smov 128   ;;  %s3556_s0 = smov 8  }
 0xaac   : > { %2931 = dma.vmem_to_hbm [thread:$0]  (%p4289_p8), %s4195_s14, 256, %s4193_s28, %s2208_s15, %s3555_s27, %s3555_s27, %s3556_s0  }
 0xaad PF: > { %s2254_s2 = sand.u32 1, %s3523_s17   ;;  %p4291_p9 = scmp.ne.s32.totalorder %s4272_s21, 0 }
 0xaae   : > { %p4292_p4 = scmp.ge.s32.totalorder %s3535_s20, 2  ;;  %s2255_s10 = scalar_lea.sflag [#allocation4], %s2254_s2 }
 0xab0   : > { %p2968_p12 = pnand %p4292_p4, %p4291_p9 }
 0xab2   : > { %3514 = dma.done.wait (!%p2968_p12), %s2255_s10, 256  }
 0xab3   : > { %3516 = vsyncadd (!%p2968_p12), %s2255_s10, 4294967040  ;;  %s2264_s22 = scalar_lea.sflag [#allocation21], %s2254_s2 }
 0xab4   : > { %3518 = dma.done.wait (!%p2968_p12), %s2264_s22, 128  }
 0xab5   : > { %3520 = vsyncadd (!%p2968_p12), %s2264_s22, 4294967168  ;;  %p33_p8 = scmp.ge.s32.totalorder %s3871_s16, 4   ;;  %s4293_s17 = smov %s3527_s18 }
 0xab6   : > { %s4294_s18 = smov %s3531_s19  ;;  %s4295_s19 = smov %s3883_s11 }
 0xab7   : > { %s4296_s20 = smov %s3871_s16  ;;  %35 = sbr.rel (!%p33_p8) target bundleno = 17 (0x11), region = 159 }
 0xabe   :  { %2269 = vsyncpa [#allocation3], 1 }
 0xabf   :  { %2271 = vsyncpa [#allocation3 + $0x1], 1 }
 0xac0   :  { %2272 = vsyncpa [#allocation6], 1 }
 0xac1   :  { %2274 = vsyncpa [#allocation6 + $0x1], 1 }
 0xac2   :  { %2275 = vsyncpa [#allocation9], 1 }
 0xac3   :  { %2276 = vsyncpa [#allocation12], 1 }
 0xac4   :  { %2277 = vsyncpa [#allocation15], 1 }
 0xac5   :  { %2278 = vsyncpa [#allocation18], 1 }
 0xac6   :  { %2279 = vsyncpa [#allocation4], 1 }
 0xac7   :  { %2281 = vsyncpa [#allocation4 + $0x1], 1 }
 0xac8   :  { %2282 = vsyncpa [#allocation21], 1 }
 0xac9   :  { %2284 = vsyncpa [#allocation21 + $0x1], 1 }

</bundles_post_ra>
